<compile_context>
chip_gen: v6e
topology: v6e:2x2x1
jax: 0.10.0
libtpu: 0.0.40
codegen_flags: <defaults>
</compile_context>

<pallas_src>
import functools

import jax
import jax.numpy as jnp
from jax.experimental import pallas as pl
from jax.experimental.pallas import tpu as pltpu


def aster_decoder_kernel(src2d_ref, emb2d_ref,
                         w_src_ref,        # (C, 5H)  = [W_ih_ctx | i2h_w]
                         w_h_ref,          # (H, 5H)  = [W_hh | h2h_w]
                         h2h_b_ref,        # (1, H)
                         score_w_ref,      # (1, H)
                         w_ih_e_ref,       # (E, 4H)
                         b_ref,            # (1, 4H)  b_ih + b_hh
                         gen_w_ref,        # (H, NCP) lane-dense padded
                         gen_b_ref,        # (1, NCP)
                         probs_ref,        # out: (T*B, NCP)
                         eg_sc,            # scratch: (T*B, 4H) embedding gate contrib
                         hs_sc,            # scratch: (T*B, H)  output hiddens
                         *, B, L, T):
    H = w_h_ref.shape[0]

    # ---- hoisted, step-invariant projections (computed once per call) ----
    src_proj = jnp.dot(src2d_ref[...], w_src_ref[...],
                       preferred_element_type=jnp.float32)          # (B*L, 5H)
    src_gates = src_proj[:, :4 * H].reshape(B, L, 4 * H)            # src @ W_ih_ctx
    src_feat = src_proj[:, 4 * H:].reshape(B, L, H)                 # i2h(src)

    # embedding gate contribution for all T steps (teacher forcing -> known upfront)
    eg_sc[...] = jnp.dot(emb2d_ref[...], w_ih_e_ref[...],
                         preferred_element_type=jnp.float32)        # (T*B, 4H)

    w_h = w_h_ref[...]
    h2h_b = h2h_b_ref[...]
    score_w = score_w_ref[...]                                      # (1, H)
    b_all = b_ref[...]                                              # (1, 4H)

    def step(t, carry):
        h_prev, c_prev = carry
        # ---- AttentionCell: only the h-dependent work stays inside the loop ----
        h_proj = jnp.dot(h_prev, w_h, preferred_element_type=jnp.float32)  # (B, 5H)
        h_gates = h_proj[:, :4 * H]                                        # h @ W_hh
        hid_proj = h_proj[:, 4 * H:] + h2h_b                               # h2h(h)
        e = jnp.tanh(src_feat + hid_proj[:, None, :])                      # (B, L, H)
        # score(.) as VPU multiply + lane reduction (no N=1 MXU matmul)
        logit = jnp.sum(e * score_w, axis=-1)                              # (B, L)
        logit = logit - jnp.max(logit, axis=1, keepdims=True)
        p = jnp.exp(logit)
        inv = pl.reciprocal(jnp.sum(p, axis=1, keepdims=True), approx=True)
        alpha = p * inv                                                    # (B, L)
        # context @ W_ih_ctx  ==  alpha-weighted sum of precomputed src_gates
        ctx_gates = jnp.sum(alpha[:, :, None] * src_gates, axis=1)         # (B, 4H)
        # ---- LSTMCell on concat([context, emb]) (gates assembled additively) ----
        gates = ctx_gates + h_gates + eg_sc[pl.ds(t * B, B), :] + b_all    # (B, 4H)
        i_g = jax.nn.sigmoid(gates[:, 0:H])
        f_g = jax.nn.sigmoid(gates[:, H:2 * H])
        g_g = jnp.tanh(gates[:, 2 * H:3 * H])
        o_g = jax.nn.sigmoid(gates[:, 3 * H:4 * H])
        c_new = f_g * c_prev + i_g * g_g
        h_new = o_g * jnp.tanh(c_new)
        hs_sc[pl.ds(t * B, B), :] = h_new
        return (h_new, c_new)

    h0 = jnp.zeros((B, H), jnp.float32)
    c0 = jnp.zeros((B, H), jnp.float32)
    jax.lax.fori_loop(0, T, step, (h0, c0), unroll=True)

    # ---- generator: one (T*B, H) @ (H, NCP) matmul, one lane-dense store ----
    probs_ref[...] = (jnp.dot(hs_sc[...], gen_w_ref[...],
                              preferred_element_type=jnp.float32)
                      + gen_b_ref[...])


def aster_decoder_forward(src, text, params, batch_max_length):
    """Teacher-forcing forward pass (is_train=True, teacher_forcing_ratio=1.0)."""
    B, L, C = src.shape
    T = batch_max_length - 1
    E = params['emb_table'].shape[1]
    H = params['h2h_w'].shape[0]
    NC = params['gen_w'].shape[1]
    NCP = 128 * pl.cdiv(NC, 128)           # lane-dense padded class dim

    # ---- glue (plain XLA): embedding gather, step-major flattening, weight fusion ----
    emb_all = params['emb_table'][text[:, :T]]                       # (B, T, E)
    emb2d = jnp.transpose(emb_all, (1, 0, 2)).reshape(T * B, E)      # (T*B, E)
    src2d = src.reshape(B * L, C)                                    # (B*L, C)

    # fused step-invariant / h-dependent weights (gate block first -> aligned slices)
    w_src = jnp.concatenate([params['w_ih_c'], params['i2h_w']], axis=1)   # (C, 5H)
    w_h = jnp.concatenate([params['w_hh'], params['h2h_w']], axis=1)       # (H, 5H)
    score_row = params['score_w'].reshape(1, H)                            # (1, H)
    gen_w_p = jnp.pad(params['gen_w'], ((0, 0), (0, NCP - NC)))            # (H, NCP)
    gen_b_p = jnp.pad(params['gen_b'], ((0, 0), (0, NCP - NC)))            # (1, NCP)

    vmem = pl.BlockSpec(memory_space=pltpu.MemorySpace.VMEM)
    kernel = functools.partial(aster_decoder_kernel, B=B, L=L, T=T)

    probs_flat = pl.pallas_call(
        kernel,
        out_shape=jax.ShapeDtypeStruct((T * B, NCP), jnp.float32),
        in_specs=[vmem] * 10,
        out_specs=vmem,
        scratch_shapes=[pltpu.VMEM((T * B, 4 * H), jnp.float32),   # emb gate contrib
                        pltpu.VMEM((T * B, H), jnp.float32)],      # output hiddens
    )(src2d, emb2d, w_src, w_h, params['h2h_b'], score_row,
      params['w_ih_e'], params['b_all'], gen_w_p, gen_b_p)

    probs = probs_flat.reshape(T, B, NCP).transpose(1, 0, 2)        # (B, T, NCP)
    return probs[:, :, :NC]


def reference_forward(src, text, params, batch_max_length):
    """Pure-JAX reference mirroring the PyTorch teacher-forcing path."""
    B, L, C = src.shape
    T = batch_max_length - 1
    H = params['h2h_w'].shape[0]
    h = jnp.zeros((B, H), jnp.float32)
    c = jnp.zeros((B, H), jnp.float32)
    hs = []
    for i in range(T):
        emb = params['emb_table'][text[:, i]]
        src_feat = jnp.einsum('blc,ch->blh', src, params['i2h_w'])
        hid_proj = h @ params['h2h_w'] + params['h2h_b'][0]
        e = jnp.tanh(src_feat + hid_proj[:, None, :])
        logit = jnp.einsum('blh,ho->bl', e, params['score_w'])
        alpha = jax.nn.softmax(logit, axis=1)
        context = jnp.sum(alpha[:, :, None] * src, axis=1)
        gates = (context @ params['w_ih_c'] + emb @ params['w_ih_e']
                 + h @ params['w_hh'] + params['b_all'][0])
        i_g = jax.nn.sigmoid(gates[:, :H])
        f_g = jax.nn.sigmoid(gates[:, H:2 * H])
        g_g = jnp.tanh(gates[:, 2 * H:3 * H])
        o_g = jax.nn.sigmoid(gates[:, 3 * H:])
        c = f_g * c + i_g * g_g
        h = o_g * jnp.tanh(c)
        hs.append(h)
    out_h = jnp.stack(hs, axis=1)                  # (B, T, H)
    return jnp.einsum('bth,hn->btn', out_h, params['gen_w']) + params['gen_b'][0]


if __name__ == "__main__":
    # Small shapes consistent with the module's forward.
    B = 2                  # batch
    L = 8                  # encoder steps (src length)
    SRC_DIM = 32           # src_dim (contextual feature channels)
    EMB_DIM = 32           # embedding_dim
    HID_DIM = 32           # hidden_dim
    NUM_CLASSES = 20
    BATCH_MAX_LEN = 9      # num_steps = 8
    PAD_ID, ST_ID = 0, 1

    key = jax.random.PRNGKey(0)
    ks = jax.random.split(key, 16)

    def init(k, shape, scale=0.1):
        return (scale * jax.random.normal(k, shape)).astype(jnp.float32)

    params = {
        # nn.Embedding(num_classes + 1, embedding_dim)
        'emb_table': init(ks[0], (NUM_CLASSES + 1, EMB_DIM)),
        # AttentionCell: i2h (no bias), h2h (bias), score (no bias)
        'i2h_w': init(ks[1], (SRC_DIM, HID_DIM)),
        'h2h_w': init(ks[2], (HID_DIM, HID_DIM)),
        'h2h_b': init(ks[3], (1, HID_DIM)),
        'score_w': init(ks[4], (HID_DIM, 1)),
        # LSTMCell(src_dim + embedding_dim, hidden_dim): gates order i,f,g,o
        'w_ih_c': init(ks[5], (SRC_DIM, 4 * HID_DIM)),   # W_ih columns for context
        'w_ih_e': init(ks[6], (EMB_DIM, 4 * HID_DIM)),   # W_ih columns for embedding
        'w_hh': init(ks[7], (HID_DIM, 4 * HID_DIM)),
        'b_all': init(ks[8], (1, 4 * HID_DIM)),          # b_ih + b_hh combined
        # generator: Linear(hidden_dim, num_classes)
        'gen_w': init(ks[9], (HID_DIM, NUM_CLASSES)),
        'gen_b': init(ks[10], (1, NUM_CLASSES)),
    }

    src = init(ks[11], (B, L, SRC_DIM), scale=1.0)                     # encoder features
    text = jax.random.randint(ks[12], (B, BATCH_MAX_LEN), 0, NUM_CLASSES + 1)
    text = text.at[:, 0].set(ST_ID)                                    # text[:, 0] = [START]

    probs = aster_decoder_forward(src, text, params, BATCH_MAX_LEN)
    probs = jax.block_until_ready(probs)

    ref = reference_forward(src, text, params, BATCH_MAX_LEN)
    assert probs.shape == (B, BATCH_MAX_LEN - 1, NUM_CLASSES)
    # approx-reciprocal softmax + reassociated (hoisted) matmuls -> slightly looser tol
    assert jnp.allclose(probs, ref, atol=2e-3, rtol=2e-3), (
        float(jnp.max(jnp.abs(probs - ref))))

    print("KERNEL_OK")
</pallas_src>

<mosaic_0001>
module attributes {stable_mosaic.version = 11 : i64} {
  func.func @aster_decoder_kernel(%arg0: memref<16x32xf32, #tpu.memory_space<vmem>>, %arg1: memref<16x32xf32, #tpu.memory_space<vmem>>, %arg2: memref<32x160xf32, #tpu.memory_space<vmem>>, %arg3: memref<32x160xf32, #tpu.memory_space<vmem>>, %arg4: memref<1x32xf32, #tpu.memory_space<vmem>>, %arg5: memref<1x32xf32, #tpu.memory_space<vmem>>, %arg6: memref<32x128xf32, #tpu.memory_space<vmem>>, %arg7: memref<1x128xf32, #tpu.memory_space<vmem>>, %arg8: memref<32x128xf32, #tpu.memory_space<vmem>>, %arg9: memref<1x128xf32, #tpu.memory_space<vmem>>, %arg10: memref<16x128xf32, #tpu.memory_space<vmem>>, %arg11: memref<16x128xf32, #tpu.memory_space<vmem>>, %arg12: memref<16x32xf32, #tpu.memory_space<vmem>>) attributes {dimension_semantics = [], scalar_prefetch = 0 : i64, scratch_operands = 2 : i64, tpu.core_type = #tpu.core_type<tc>} {
    %c0 = arith.constant 0 : index
    %c0_0 = arith.constant 0 : index
    %0 = vector.load %arg0[%c0, %c0_0] : memref<16x32xf32, #tpu.memory_space<vmem>>, vector<16x32xf32>
    %c0_1 = arith.constant 0 : index
    %c0_2 = arith.constant 0 : index
    %1 = vector.load %arg2[%c0_1, %c0_2] : memref<32x160xf32, #tpu.memory_space<vmem>>, vector<32x160xf32>
    %cst = arith.constant dense<0.000000e+00> : vector<16x160xf32>
    %2 = tpu.matmul %0, %1, %cst {dimension_numbers = #tpu.dot_dimension_numbers<[1], [0], [0], [1], [0, 0, 1, 1], [], []>} : vector<16x32xf32>, vector<32x160xf32>, vector<16x160xf32> -> vector<16x160xf32>
    %3 = vector.extract_strided_slice %2 {offsets = [0, 0], sizes = [16, 128], strides = [1, 1]} : vector<16x160xf32> to vector<16x128xf32>
    %4 = vector.shape_cast %3 : vector<16x128xf32> to vector<2x8x128xf32>
    %5 = vector.extract_strided_slice %2 {offsets = [0, 128], sizes = [16, 32], strides = [1, 1]} : vector<16x160xf32> to vector<16x32xf32>
    %6 = vector.shape_cast %5 : vector<16x32xf32> to vector<2x8x32xf32>
    %c0_3 = arith.constant 0 : index
    %c0_4 = arith.constant 0 : index
    %7 = vector.load %arg1[%c0_3, %c0_4] : memref<16x32xf32, #tpu.memory_space<vmem>>, vector<16x32xf32>
    %c0_5 = arith.constant 0 : index
    %c0_6 = arith.constant 0 : index
    %8 = vector.load %arg6[%c0_5, %c0_6] : memref<32x128xf32, #tpu.memory_space<vmem>>, vector<32x128xf32>
    %cst_7 = arith.constant dense<0.000000e+00> : vector<16x128xf32>
    %9 = tpu.matmul %7, %8, %cst_7 {dimension_numbers = #tpu.dot_dimension_numbers<[1], [0], [0], [1], [0, 0, 1, 1], [], []>} : vector<16x32xf32>, vector<32x128xf32>, vector<16x128xf32> -> vector<16x128xf32>
    %c0_8 = arith.constant 0 : index
    %c0_9 = arith.constant 0 : index
    %10 = vector.load %arg11[%c0_8, %c0_9] : memref<16x128xf32, #tpu.memory_space<vmem>>, vector<16x128xf32>
    tpu.vector_store %arg11[%c0_8, %c0_9], %9 {strides = array<i32>} : memref<16x128xf32, #tpu.memory_space<vmem>>, vector<16x128xf32>,
    %c0_10 = arith.constant 0 : index
    %c0_11 = arith.constant 0 : index
    %11 = vector.load %arg3[%c0_10, %c0_11] : memref<32x160xf32, #tpu.memory_space<vmem>>, vector<32x160xf32>
    %c0_12 = arith.constant 0 : index
    %c0_13 = arith.constant 0 : index
    %12 = vector.load %arg4[%c0_12, %c0_13] : memref<1x32xf32, #tpu.memory_space<vmem>>, vector<1x32xf32>
    %c0_14 = arith.constant 0 : index
    %c0_15 = arith.constant 0 : index
    %13 = vector.load %arg5[%c0_14, %c0_15] : memref<1x32xf32, #tpu.memory_space<vmem>>, vector<1x32xf32>
    %c0_16 = arith.constant 0 : index
    %c0_17 = arith.constant 0 : index
    %14 = vector.load %arg7[%c0_16, %c0_17] : memref<1x128xf32, #tpu.memory_space<vmem>>, vector<1x128xf32>
    %cst_18 = arith.constant 0.000000e+00 : f32
    %15 = vector.broadcast %cst_18 : f32 to vector<2x32xf32>
    %cst_19 = arith.constant 0.000000e+00 : f32
    %16 = vector.broadcast %cst_19 : f32 to vector<2x32xf32>
    %c0_i32 = arith.constant 0 : i32
    %cst_20 = arith.constant dense<0.000000e+00> : vector<2x160xf32>
    %17 = tpu.matmul %15, %11, %cst_20 {dimension_numbers = #tpu.dot_dimension_numbers<[1], [0], [0], [1], [0, 0, 1, 1], [], []>} : vector<2x32xf32>, vector<32x160xf32>, vector<2x160xf32> -> vector<2x160xf32>
    %18 = vector.extract_strided_slice %17 {offsets = [0, 0], sizes = [2, 128], strides = [1, 1]} : vector<2x160xf32> to vector<2x128xf32>
    %19 = vector.extract_strided_slice %17 {offsets = [0, 128], sizes = [2, 32], strides = [1, 1]} : vector<2x160xf32> to vector<2x32xf32>
    %20 = vector.broadcast %12 : vector<1x32xf32> to vector<2x32xf32>
    %21 = arith.addf %19, %20 : vector<2x32xf32>
    %22 = vector.shape_cast %21 : vector<2x32xf32> to vector<2x1x32xf32>
    %23 = vector.broadcast %22 : vector<2x1x32xf32> to vector<2x8x32xf32>
    %24 = arith.addf %6, %23 : vector<2x8x32xf32>
    %25 = math.tanh %24 : vector<2x8x32xf32>
    %26 = vector.shape_cast %13 : vector<1x32xf32> to vector<1x1x32xf32>
    %27 = vector.broadcast %26 : vector<1x1x32xf32> to vector<2x8x32xf32>
    %28 = arith.mulf %25, %27 : vector<2x8x32xf32>
    %cst_21 = arith.constant dense<0.000000e+00> : vector<2x8xf32>
    %29 = vector.multi_reduction <add>, %28, %cst_21 [2] : vector<2x8x32xf32> to vector<2x8xf32>
    %cst_22 = arith.constant dense<0xFF800000> : vector<2xf32>
    %30 = vector.multi_reduction <maximumf>, %29, %cst_22 [1] : vector<2x8xf32> to vector<2xf32>
    %31 = vector.shape_cast %30 : vector<2xf32> to vector<2x1xf32>
    %32 = vector.broadcast %31 : vector<2x1xf32> to vector<2x8xf32>
    %33 = arith.subf %29, %32 : vector<2x8xf32>
    %34 = math.exp %33 : vector<2x8xf32>
    %cst_23 = arith.constant dense<0.000000e+00> : vector<2xf32>
    %35 = vector.multi_reduction <add>, %34, %cst_23 [1] : vector<2x8xf32> to vector<2xf32>
    %36 = vector.shape_cast %35 : vector<2xf32> to vector<2x1xf32>
    %37 = tpu.reciprocal %36 {approx = true} : vector<2x1xf32> -> vector<2x1xf32>
    %38 = vector.broadcast %37 : vector<2x1xf32> to vector<2x8xf32>
    %39 = arith.mulf %34, %38 : vector<2x8xf32>
    %40 = vector.shape_cast %39 : vector<2x8xf32> to vector<2x8x1xf32>
    %41 = vector.broadcast %40 : vector<2x8x1xf32> to vector<2x8x128xf32>
    %42 = arith.mulf %41, %4 : vector<2x8x128xf32>
    %cst_24 = arith.constant dense<0.000000e+00> : vector<2x128xf32>
    %43 = vector.multi_reduction <add>, %42, %cst_24 [1] : vector<2x8x128xf32> to vector<2x128xf32>
    %44 = arith.addf %43, %18 : vector<2x128xf32>
    %c2_i32 = arith.constant 2 : i32
    %45 = arith.muli %c0_i32, %c2_i32 : i32
    %46 = arith.index_cast %45 : i32 to index
    %c0_25 = arith.constant 0 : index
    %47 = vector.load %arg11[%46, %c0_25] : memref<16x128xf32, #tpu.memory_space<vmem>>, vector<2x128xf32>
    %48 = arith.addf %44, %47 : vector<2x128xf32>
    %49 = vector.broadcast %14 : vector<1x128xf32> to vector<2x128xf32>
    %50 = arith.addf %48, %49 : vector<2x128xf32>
    %51 = vector.extract_strided_slice %50 {offsets = [0, 0], sizes = [2, 32], strides = [1, 1]} : vector<2x128xf32> to vector<2x32xf32>
    %52 = arith.negf %51 : vector<2x32xf32>
    %53 = math.exp %52 : vector<2x32xf32>
    %cst_26 = arith.constant 1.000000e+00 : f32
    %54 = vector.broadcast %cst_26 : f32 to vector<2x32xf32>
    %55 = arith.addf %54, %53 : vector<2x32xf32>
    %56 = arith.divf %54, %55 : vector<2x32xf32>
    %57 = vector.extract_strided_slice %50 {offsets = [0, 32], sizes = [2, 32], strides = [1, 1]} : vector<2x128xf32> to vector<2x32xf32>
    %58 = arith.negf %57 : vector<2x32xf32>
    %59 = math.exp %58 : vector<2x32xf32>
    %cst_27 = arith.constant 1.000000e+00 : f32
    %60 = vector.broadcast %cst_27 : f32 to vector<2x32xf32>
    %61 = arith.addf %60, %59 : vector<2x32xf32>
    %62 = arith.divf %60, %61 : vector<2x32xf32>
    %63 = vector.extract_strided_slice %50 {offsets = [0, 64], sizes = [2, 32], strides = [1, 1]} : vector<2x128xf32> to vector<2x32xf32>
    %64 = math.tanh %63 : vector<2x32xf32>
    %65 = vector.extract_strided_slice %50 {offsets = [0, 96], sizes = [2, 32], strides = [1, 1]} : vector<2x128xf32> to vector<2x32xf32>
    %66 = arith.negf %65 : vector<2x32xf32>
    %67 = math.exp %66 : vector<2x32xf32>
    %cst_28 = arith.constant 1.000000e+00 : f32
    %68 = vector.broadcast %cst_28 : f32 to vector<2x32xf32>
    %69 = arith.addf %68, %67 : vector<2x32xf32>
    %70 = arith.divf %68, %69 : vector<2x32xf32>
    %71 = arith.mulf %62, %16 : vector<2x32xf32>
    %72 = arith.mulf %56, %64 : vector<2x32xf32>
    %73 = arith.addf %71, %72 : vector<2x32xf32>
    %74 = math.tanh %73 : vector<2x32xf32>
    %75 = arith.mulf %70, %74 : vector<2x32xf32>
    %c2_i32_29 = arith.constant 2 : i32
    %76 = arith.muli %c0_i32, %c2_i32_29 : i32
    %77 = arith.index_cast %76 : i32 to index
    %c0_30 = arith.constant 0 : index
    %78 = vector.load %arg12[%77, %c0_30] : memref<16x32xf32, #tpu.memory_space<vmem>>, vector<2x32xf32>
    tpu.vector_store %arg12[%77, %c0_30], %75 {strides = array<i32>} : memref<16x32xf32, #tpu.memory_space<vmem>>, vector<2x32xf32>,
    %c1_i32 = arith.constant 1 : i32
    %cst_31 = arith.constant dense<0.000000e+00> : vector<2x160xf32>
    %79 = tpu.matmul %75, %11, %cst_31 {dimension_numbers = #tpu.dot_dimension_numbers<[1], [0], [0], [1], [0, 0, 1, 1], [], []>} : vector<2x32xf32>, vector<32x160xf32>, vector<2x160xf32> -> vector<2x160xf32>
    %80 = vector.extract_strided_slice %79 {offsets = [0, 0], sizes = [2, 128], strides = [1, 1]} : vector<2x160xf32> to vector<2x128xf32>
    %81 = vector.extract_strided_slice %79 {offsets = [0, 128], sizes = [2, 32], strides = [1, 1]} : vector<2x160xf32> to vector<2x32xf32>
    %82 = vector.broadcast %12 : vector<1x32xf32> to vector<2x32xf32>
    %83 = arith.addf %81, %82 : vector<2x32xf32>
    %84 = vector.shape_cast %83 : vector<2x32xf32> to vector<2x1x32xf32>
    %85 = vector.broadcast %84 : vector<2x1x32xf32> to vector<2x8x32xf32>
    %86 = arith.addf %6, %85 : vector<2x8x32xf32>
    %87 = math.tanh %86 : vector<2x8x32xf32>
    %88 = vector.shape_cast %13 : vector<1x32xf32> to vector<1x1x32xf32>
    %89 = vector.broadcast %88 : vector<1x1x32xf32> to vector<2x8x32xf32>
    %90 = arith.mulf %87, %89 : vector<2x8x32xf32>
    %cst_32 = arith.constant dense<0.000000e+00> : vector<2x8xf32>
    %91 = vector.multi_reduction <add>, %90, %cst_32 [2] : vector<2x8x32xf32> to vector<2x8xf32>
    %cst_33 = arith.constant dense<0xFF800000> : vector<2xf32>
    %92 = vector.multi_reduction <maximumf>, %91, %cst_33 [1] : vector<2x8xf32> to vector<2xf32>
    %93 = vector.shape_cast %92 : vector<2xf32> to vector<2x1xf32>
    %94 = vector.broadcast %93 : vector<2x1xf32> to vector<2x8xf32>
    %95 = arith.subf %91, %94 : vector<2x8xf32>
    %96 = math.exp %95 : vector<2x8xf32>
    %cst_34 = arith.constant dense<0.000000e+00> : vector<2xf32>
    %97 = vector.multi_reduction <add>, %96, %cst_34 [1] : vector<2x8xf32> to vector<2xf32>
    %98 = vector.shape_cast %97 : vector<2xf32> to vector<2x1xf32>
    %99 = tpu.reciprocal %98 {approx = true} : vector<2x1xf32> -> vector<2x1xf32>
    %100 = vector.broadcast %99 : vector<2x1xf32> to vector<2x8xf32>
    %101 = arith.mulf %96, %100 : vector<2x8xf32>
    %102 = vector.shape_cast %101 : vector<2x8xf32> to vector<2x8x1xf32>
    %103 = vector.broadcast %102 : vector<2x8x1xf32> to vector<2x8x128xf32>
    %104 = arith.mulf %103, %4 : vector<2x8x128xf32>
    %cst_35 = arith.constant dense<0.000000e+00> : vector<2x128xf32>
    %105 = vector.multi_reduction <add>, %104, %cst_35 [1] : vector<2x8x128xf32> to vector<2x128xf32>
    %106 = arith.addf %105, %80 : vector<2x128xf32>
    %c2_i32_36 = arith.constant 2 : i32
    %107 = arith.muli %c1_i32, %c2_i32_36 : i32
    %108 = arith.index_cast %107 : i32 to index
    %c0_37 = arith.constant 0 : index
    %109 = vector.load %arg11[%108, %c0_37] : memref<16x128xf32, #tpu.memory_space<vmem>>, vector<2x128xf32>
    %110 = arith.addf %106, %109 : vector<2x128xf32>
    %111 = vector.broadcast %14 : vector<1x128xf32> to vector<2x128xf32>
    %112 = arith.addf %110, %111 : vector<2x128xf32>
    %113 = vector.extract_strided_slice %112 {offsets = [0, 0], sizes = [2, 32], strides = [1, 1]} : vector<2x128xf32> to vector<2x32xf32>
    %114 = arith.negf %113 : vector<2x32xf32>
    %115 = math.exp %114 : vector<2x32xf32>
    %cst_38 = arith.constant 1.000000e+00 : f32
    %116 = vector.broadcast %cst_38 : f32 to vector<2x32xf32>
    %117 = arith.addf %116, %115 : vector<2x32xf32>
    %118 = arith.divf %116, %117 : vector<2x32xf32>
    %119 = vector.extract_strided_slice %112 {offsets = [0, 32], sizes = [2, 32], strides = [1, 1]} : vector<2x128xf32> to vector<2x32xf32>
    %120 = arith.negf %119 : vector<2x32xf32>
    %121 = math.exp %120 : vector<2x32xf32>
    %cst_39 = arith.constant 1.000000e+00 : f32
    %122 = vector.broadcast %cst_39 : f32 to vector<2x32xf32>
    %123 = arith.addf %122, %121 : vector<2x32xf32>
    %124 = arith.divf %122, %123 : vector<2x32xf32>
    %125 = vector.extract_strided_slice %112 {offsets = [0, 64], sizes = [2, 32], strides = [1, 1]} : vector<2x128xf32> to vector<2x32xf32>
    %126 = math.tanh %125 : vector<2x32xf32>
    %127 = vector.extract_strided_slice %112 {offsets = [0, 96], sizes = [2, 32], strides = [1, 1]} : vector<2x128xf32> to vector<2x32xf32>
    %128 = arith.negf %127 : vector<2x32xf32>
    %129 = math.exp %128 : vector<2x32xf32>
    %cst_40 = arith.constant 1.000000e+00 : f32
    %130 = vector.broadcast %cst_40 : f32 to vector<2x32xf32>
    %131 = arith.addf %130, %129 : vector<2x32xf32>
    %132 = arith.divf %130, %131 : vector<2x32xf32>
    %133 = arith.mulf %124, %73 : vector<2x32xf32>
    %134 = arith.mulf %118, %126 : vector<2x32xf32>
    %135 = arith.addf %133, %134 : vector<2x32xf32>
    %136 = math.tanh %135 : vector<2x32xf32>
    %137 = arith.mulf %132, %136 : vector<2x32xf32>
    %c2_i32_41 = arith.constant 2 : i32
    %138 = arith.muli %c1_i32, %c2_i32_41 : i32
    %139 = arith.index_cast %138 : i32 to index
    %c0_42 = arith.constant 0 : index
    %140 = vector.load %arg12[%139, %c0_42] : memref<16x32xf32, #tpu.memory_space<vmem>>, vector<2x32xf32>
    tpu.vector_store %arg12[%139, %c0_42], %137 {strides = array<i32>} : memref<16x32xf32, #tpu.memory_space<vmem>>, vector<2x32xf32>,
    %c2_i32_43 = arith.constant 2 : i32
    %cst_44 = arith.constant dense<0.000000e+00> : vector<2x160xf32>
    %141 = tpu.matmul %137, %11, %cst_44 {dimension_numbers = #tpu.dot_dimension_numbers<[1], [0], [0], [1], [0, 0, 1, 1], [], []>} : vector<2x32xf32>, vector<32x160xf32>, vector<2x160xf32> -> vector<2x160xf32>
    %142 = vector.extract_strided_slice %141 {offsets = [0, 0], sizes = [2, 128], strides = [1, 1]} : vector<2x160xf32> to vector<2x128xf32>
    %143 = vector.extract_strided_slice %141 {offsets = [0, 128], sizes = [2, 32], strides = [1, 1]} : vector<2x160xf32> to vector<2x32xf32>
    %144 = vector.broadcast %12 : vector<1x32xf32> to vector<2x32xf32>
    %145 = arith.addf %143, %144 : vector<2x32xf32>
    %146 = vector.shape_cast %145 : vector<2x32xf32> to vector<2x1x32xf32>
    %147 = vector.broadcast %146 : vector<2x1x32xf32> to vector<2x8x32xf32>
    %148 = arith.addf %6, %147 : vector<2x8x32xf32>
    %149 = math.tanh %148 : vector<2x8x32xf32>
    %150 = vector.shape_cast %13 : vector<1x32xf32> to vector<1x1x32xf32>
    %151 = vector.broadcast %150 : vector<1x1x32xf32> to vector<2x8x32xf32>
    %152 = arith.mulf %149, %151 : vector<2x8x32xf32>
    %cst_45 = arith.constant dense<0.000000e+00> : vector<2x8xf32>
    %153 = vector.multi_reduction <add>, %152, %cst_45 [2] : vector<2x8x32xf32> to vector<2x8xf32>
    %cst_46 = arith.constant dense<0xFF800000> : vector<2xf32>
    %154 = vector.multi_reduction <maximumf>, %153, %cst_46 [1] : vector<2x8xf32> to vector<2xf32>
    %155 = vector.shape_cast %154 : vector<2xf32> to vector<2x1xf32>
    %156 = vector.broadcast %155 : vector<2x1xf32> to vector<2x8xf32>
    %157 = arith.subf %153, %156 : vector<2x8xf32>
    %158 = math.exp %157 : vector<2x8xf32>
    %cst_47 = arith.constant dense<0.000000e+00> : vector<2xf32>
    %159 = vector.multi_reduction <add>, %158, %cst_47 [1] : vector<2x8xf32> to vector<2xf32>
    %160 = vector.shape_cast %159 : vector<2xf32> to vector<2x1xf32>
    %161 = tpu.reciprocal %160 {approx = true} : vector<2x1xf32> -> vector<2x1xf32>
    %162 = vector.broadcast %161 : vector<2x1xf32> to vector<2x8xf32>
    %163 = arith.mulf %158, %162 : vector<2x8xf32>
    %164 = vector.shape_cast %163 : vector<2x8xf32> to vector<2x8x1xf32>
    %165 = vector.broadcast %164 : vector<2x8x1xf32> to vector<2x8x128xf32>
    %166 = arith.mulf %165, %4 : vector<2x8x128xf32>
    %cst_48 = arith.constant dense<0.000000e+00> : vector<2x128xf32>
    %167 = vector.multi_reduction <add>, %166, %cst_48 [1] : vector<2x8x128xf32> to vector<2x128xf32>
    %168 = arith.addf %167, %142 : vector<2x128xf32>
    %c2_i32_49 = arith.constant 2 : i32
    %169 = arith.muli %c2_i32_43, %c2_i32_49 : i32
    %170 = arith.index_cast %169 : i32 to index
    %c0_50 = arith.constant 0 : index
    %171 = vector.load %arg11[%170, %c0_50] : memref<16x128xf32, #tpu.memory_space<vmem>>, vector<2x128xf32>
    %172 = arith.addf %168, %171 : vector<2x128xf32>
    %173 = vector.broadcast %14 : vector<1x128xf32> to vector<2x128xf32>
    %174 = arith.addf %172, %173 : vector<2x128xf32>
    %175 = vector.extract_strided_slice %174 {offsets = [0, 0], sizes = [2, 32], strides = [1, 1]} : vector<2x128xf32> to vector<2x32xf32>
    %176 = arith.negf %175 : vector<2x32xf32>
    %177 = math.exp %176 : vector<2x32xf32>
    %cst_51 = arith.constant 1.000000e+00 : f32
    %178 = vector.broadcast %cst_51 : f32 to vector<2x32xf32>
    %179 = arith.addf %178, %177 : vector<2x32xf32>
    %180 = arith.divf %178, %179 : vector<2x32xf32>
    %181 = vector.extract_strided_slice %174 {offsets = [0, 32], sizes = [2, 32], strides = [1, 1]} : vector<2x128xf32> to vector<2x32xf32>
    %182 = arith.negf %181 : vector<2x32xf32>
    %183 = math.exp %182 : vector<2x32xf32>
    %cst_52 = arith.constant 1.000000e+00 : f32
    %184 = vector.broadcast %cst_52 : f32 to vector<2x32xf32>
    %185 = arith.addf %184, %183 : vector<2x32xf32>
    %186 = arith.divf %184, %185 : vector<2x32xf32>
    %187 = vector.extract_strided_slice %174 {offsets = [0, 64], sizes = [2, 32], strides = [1, 1]} : vector<2x128xf32> to vector<2x32xf32>
    %188 = math.tanh %187 : vector<2x32xf32>
    %189 = vector.extract_strided_slice %174 {offsets = [0, 96], sizes = [2, 32], strides = [1, 1]} : vector<2x128xf32> to vector<2x32xf32>
    %190 = arith.negf %189 : vector<2x32xf32>
    %191 = math.exp %190 : vector<2x32xf32>
    %cst_53 = arith.constant 1.000000e+00 : f32
    %192 = vector.broadcast %cst_53 : f32 to vector<2x32xf32>
    %193 = arith.addf %192, %191 : vector<2x32xf32>
    %194 = arith.divf %192, %193 : vector<2x32xf32>
    %195 = arith.mulf %186, %135 : vector<2x32xf32>
    %196 = arith.mulf %180, %188 : vector<2x32xf32>
    %197 = arith.addf %195, %196 : vector<2x32xf32>
    %198 = math.tanh %197 : vector<2x32xf32>
    %199 = arith.mulf %194, %198 : vector<2x32xf32>
    %c2_i32_54 = arith.constant 2 : i32
    %200 = arith.muli %c2_i32_43, %c2_i32_54 : i32
    %201 = arith.index_cast %200 : i32 to index
    %c0_55 = arith.constant 0 : index
    %202 = vector.load %arg12[%201, %c0_55] : memref<16x32xf32, #tpu.memory_space<vmem>>, vector<2x32xf32>
    tpu.vector_store %arg12[%201, %c0_55], %199 {strides = array<i32>} : memref<16x32xf32, #tpu.memory_space<vmem>>, vector<2x32xf32>,
    %c3_i32 = arith.constant 3 : i32
    %cst_56 = arith.constant dense<0.000000e+00> : vector<2x160xf32>
    %203 = tpu.matmul %199, %11, %cst_56 {dimension_numbers = #tpu.dot_dimension_numbers<[1], [0], [0], [1], [0, 0, 1, 1], [], []>} : vector<2x32xf32>, vector<32x160xf32>, vector<2x160xf32> -> vector<2x160xf32>
    %204 = vector.extract_strided_slice %203 {offsets = [0, 0], sizes = [2, 128], strides = [1, 1]} : vector<2x160xf32> to vector<2x128xf32>
    %205 = vector.extract_strided_slice %203 {offsets = [0, 128], sizes = [2, 32], strides = [1, 1]} : vector<2x160xf32> to vector<2x32xf32>
    %206 = vector.broadcast %12 : vector<1x32xf32> to vector<2x32xf32>
    %207 = arith.addf %205, %206 : vector<2x32xf32>
    %208 = vector.shape_cast %207 : vector<2x32xf32> to vector<2x1x32xf32>
    %209 = vector.broadcast %208 : vector<2x1x32xf32> to vector<2x8x32xf32>
    %210 = arith.addf %6, %209 : vector<2x8x32xf32>
    %211 = math.tanh %210 : vector<2x8x32xf32>
    %212 = vector.shape_cast %13 : vector<1x32xf32> to vector<1x1x32xf32>
    %213 = vector.broadcast %212 : vector<1x1x32xf32> to vector<2x8x32xf32>
    %214 = arith.mulf %211, %213 : vector<2x8x32xf32>
    %cst_57 = arith.constant dense<0.000000e+00> : vector<2x8xf32>
    %215 = vector.multi_reduction <add>, %214, %cst_57 [2] : vector<2x8x32xf32> to vector<2x8xf32>
    %cst_58 = arith.constant dense<0xFF800000> : vector<2xf32>
    %216 = vector.multi_reduction <maximumf>, %215, %cst_58 [1] : vector<2x8xf32> to vector<2xf32>
    %217 = vector.shape_cast %216 : vector<2xf32> to vector<2x1xf32>
    %218 = vector.broadcast %217 : vector<2x1xf32> to vector<2x8xf32>
    %219 = arith.subf %215, %218 : vector<2x8xf32>
    %220 = math.exp %219 : vector<2x8xf32>
    %cst_59 = arith.constant dense<0.000000e+00> : vector<2xf32>
    %221 = vector.multi_reduction <add>, %220, %cst_59 [1] : vector<2x8xf32> to vector<2xf32>
    %222 = vector.shape_cast %221 : vector<2xf32> to vector<2x1xf32>
    %223 = tpu.reciprocal %222 {approx = true} : vector<2x1xf32> -> vector<2x1xf32>
    %224 = vector.broadcast %223 : vector<2x1xf32> to vector<2x8xf32>
    %225 = arith.mulf %220, %224 : vector<2x8xf32>
    %226 = vector.shape_cast %225 : vector<2x8xf32> to vector<2x8x1xf32>
    %227 = vector.broadcast %226 : vector<2x8x1xf32> to vector<2x8x128xf32>
    %228 = arith.mulf %227, %4 : vector<2x8x128xf32>
    %cst_60 = arith.constant dense<0.000000e+00> : vector<2x128xf32>
    %229 = vector.multi_reduction <add>, %228, %cst_60 [1] : vector<2x8x128xf32> to vector<2x128xf32>
    %230 = arith.addf %229, %204 : vector<2x128xf32>
    %c2_i32_61 = arith.constant 2 : i32
    %231 = arith.muli %c3_i32, %c2_i32_61 : i32
    %232 = arith.index_cast %231 : i32 to index
    %c0_62 = arith.constant 0 : index
    %233 = vector.load %arg11[%232, %c0_62] : memref<16x128xf32, #tpu.memory_space<vmem>>, vector<2x128xf32>
    %234 = arith.addf %230, %233 : vector<2x128xf32>
    %235 = vector.broadcast %14 : vector<1x128xf32> to vector<2x128xf32>
    %236 = arith.addf %234, %235 : vector<2x128xf32>
    %237 = vector.extract_strided_slice %236 {offsets = [0, 0], sizes = [2, 32], strides = [1, 1]} : vector<2x128xf32> to vector<2x32xf32>
    %238 = arith.negf %237 : vector<2x32xf32>
    %239 = math.exp %238 : vector<2x32xf32>
    %cst_63 = arith.constant 1.000000e+00 : f32
    %240 = vector.broadcast %cst_63 : f32 to vector<2x32xf32>
    %241 = arith.addf %240, %239 : vector<2x32xf32>
    %242 = arith.divf %240, %241 : vector<2x32xf32>
    %243 = vector.extract_strided_slice %236 {offsets = [0, 32], sizes = [2, 32], strides = [1, 1]} : vector<2x128xf32> to vector<2x32xf32>
    %244 = arith.negf %243 : vector<2x32xf32>
    %245 = math.exp %244 : vector<2x32xf32>
    %cst_64 = arith.constant 1.000000e+00 : f32
    %246 = vector.broadcast %cst_64 : f32 to vector<2x32xf32>
    %247 = arith.addf %246, %245 : vector<2x32xf32>
    %248 = arith.divf %246, %247 : vector<2x32xf32>
    %249 = vector.extract_strided_slice %236 {offsets = [0, 64], sizes = [2, 32], strides = [1, 1]} : vector<2x128xf32> to vector<2x32xf32>
    %250 = math.tanh %249 : vector<2x32xf32>
    %251 = vector.extract_strided_slice %236 {offsets = [0, 96], sizes = [2, 32], strides = [1, 1]} : vector<2x128xf32> to vector<2x32xf32>
    %252 = arith.negf %251 : vector<2x32xf32>
    %253 = math.exp %252 : vector<2x32xf32>
    %cst_65 = arith.constant 1.000000e+00 : f32
    %254 = vector.broadcast %cst_65 : f32 to vector<2x32xf32>
    %255 = arith.addf %254, %253 : vector<2x32xf32>
    %256 = arith.divf %254, %255 : vector<2x32xf32>
    %257 = arith.mulf %248, %197 : vector<2x32xf32>
    %258 = arith.mulf %242, %250 : vector<2x32xf32>
    %259 = arith.addf %257, %258 : vector<2x32xf32>
    %260 = math.tanh %259 : vector<2x32xf32>
    %261 = arith.mulf %256, %260 : vector<2x32xf32>
    %c2_i32_66 = arith.constant 2 : i32
    %262 = arith.muli %c3_i32, %c2_i32_66 : i32
    %263 = arith.index_cast %262 : i32 to index
    %c0_67 = arith.constant 0 : index
    %264 = vector.load %arg12[%263, %c0_67] : memref<16x32xf32, #tpu.memory_space<vmem>>, vector<2x32xf32>
    tpu.vector_store %arg12[%263, %c0_67], %261 {strides = array<i32>} : memref<16x32xf32, #tpu.memory_space<vmem>>, vector<2x32xf32>,
    %c4_i32 = arith.constant 4 : i32
    %cst_68 = arith.constant dense<0.000000e+00> : vector<2x160xf32>
    %265 = tpu.matmul %261, %11, %cst_68 {dimension_numbers = #tpu.dot_dimension_numbers<[1], [0], [0], [1], [0, 0, 1, 1], [], []>} : vector<2x32xf32>, vector<32x160xf32>, vector<2x160xf32> -> vector<2x160xf32>
    %266 = vector.extract_strided_slice %265 {offsets = [0, 0], sizes = [2, 128], strides = [1, 1]} : vector<2x160xf32> to vector<2x128xf32>
    %267 = vector.extract_strided_slice %265 {offsets = [0, 128], sizes = [2, 32], strides = [1, 1]} : vector<2x160xf32> to vector<2x32xf32>
    %268 = vector.broadcast %12 : vector<1x32xf32> to vector<2x32xf32>
    %269 = arith.addf %267, %268 : vector<2x32xf32>
    %270 = vector.shape_cast %269 : vector<2x32xf32> to vector<2x1x32xf32>
    %271 = vector.broadcast %270 : vector<2x1x32xf32> to vector<2x8x32xf32>
    %272 = arith.addf %6, %271 : vector<2x8x32xf32>
    %273 = math.tanh %272 : vector<2x8x32xf32>
    %274 = vector.shape_cast %13 : vector<1x32xf32> to vector<1x1x32xf32>
    %275 = vector.broadcast %274 : vector<1x1x32xf32> to vector<2x8x32xf32>
    %276 = arith.mulf %273, %275 : vector<2x8x32xf32>
    %cst_69 = arith.constant dense<0.000000e+00> : vector<2x8xf32>
    %277 = vector.multi_reduction <add>, %276, %cst_69 [2] : vector<2x8x32xf32> to vector<2x8xf32>
    %cst_70 = arith.constant dense<0xFF800000> : vector<2xf32>
    %278 = vector.multi_reduction <maximumf>, %277, %cst_70 [1] : vector<2x8xf32> to vector<2xf32>
    %279 = vector.shape_cast %278 : vector<2xf32> to vector<2x1xf32>
    %280 = vector.broadcast %279 : vector<2x1xf32> to vector<2x8xf32>
    %281 = arith.subf %277, %280 : vector<2x8xf32>
    %282 = math.exp %281 : vector<2x8xf32>
    %cst_71 = arith.constant dense<0.000000e+00> : vector<2xf32>
    %283 = vector.multi_reduction <add>, %282, %cst_71 [1] : vector<2x8xf32> to vector<2xf32>
    %284 = vector.shape_cast %283 : vector<2xf32> to vector<2x1xf32>
    %285 = tpu.reciprocal %284 {approx = true} : vector<2x1xf32> -> vector<2x1xf32>
    %286 = vector.broadcast %285 : vector<2x1xf32> to vector<2x8xf32>
    %287 = arith.mulf %282, %286 : vector<2x8xf32>
    %288 = vector.shape_cast %287 : vector<2x8xf32> to vector<2x8x1xf32>
    %289 = vector.broadcast %288 : vector<2x8x1xf32> to vector<2x8x128xf32>
    %290 = arith.mulf %289, %4 : vector<2x8x128xf32>
    %cst_72 = arith.constant dense<0.000000e+00> : vector<2x128xf32>
    %291 = vector.multi_reduction <add>, %290, %cst_72 [1] : vector<2x8x128xf32> to vector<2x128xf32>
    %292 = arith.addf %291, %266 : vector<2x128xf32>
    %c2_i32_73 = arith.constant 2 : i32
    %293 = arith.muli %c4_i32, %c2_i32_73 : i32
    %294 = arith.index_cast %293 : i32 to index
    %c0_74 = arith.constant 0 : index
    %295 = vector.load %arg11[%294, %c0_74] : memref<16x128xf32, #tpu.memory_space<vmem>>, vector<2x128xf32>
    %296 = arith.addf %292, %295 : vector<2x128xf32>
    %297 = vector.broadcast %14 : vector<1x128xf32> to vector<2x128xf32>
    %298 = arith.addf %296, %297 : vector<2x128xf32>
    %299 = vector.extract_strided_slice %298 {offsets = [0, 0], sizes = [2, 32], strides = [1, 1]} : vector<2x128xf32> to vector<2x32xf32>
    %300 = arith.negf %299 : vector<2x32xf32>
    %301 = math.exp %300 : vector<2x32xf32>
    %cst_75 = arith.constant 1.000000e+00 : f32
    %302 = vector.broadcast %cst_75 : f32 to vector<2x32xf32>
    %303 = arith.addf %302, %301 : vector<2x32xf32>
    %304 = arith.divf %302, %303 : vector<2x32xf32>
    %305 = vector.extract_strided_slice %298 {offsets = [0, 32], sizes = [2, 32], strides = [1, 1]} : vector<2x128xf32> to vector<2x32xf32>
    %306 = arith.negf %305 : vector<2x32xf32>
    %307 = math.exp %306 : vector<2x32xf32>
    %cst_76 = arith.constant 1.000000e+00 : f32
    %308 = vector.broadcast %cst_76 : f32 to vector<2x32xf32>
    %309 = arith.addf %308, %307 : vector<2x32xf32>
    %310 = arith.divf %308, %309 : vector<2x32xf32>
    %311 = vector.extract_strided_slice %298 {offsets = [0, 64], sizes = [2, 32], strides = [1, 1]} : vector<2x128xf32> to vector<2x32xf32>
    %312 = math.tanh %311 : vector<2x32xf32>
    %313 = vector.extract_strided_slice %298 {offsets = [0, 96], sizes = [2, 32], strides = [1, 1]} : vector<2x128xf32> to vector<2x32xf32>
    %314 = arith.negf %313 : vector<2x32xf32>
    %315 = math.exp %314 : vector<2x32xf32>
    %cst_77 = arith.constant 1.000000e+00 : f32
    %316 = vector.broadcast %cst_77 : f32 to vector<2x32xf32>
    %317 = arith.addf %316, %315 : vector<2x32xf32>
    %318 = arith.divf %316, %317 : vector<2x32xf32>
    %319 = arith.mulf %310, %259 : vector<2x32xf32>
    %320 = arith.mulf %304, %312 : vector<2x32xf32>
    %321 = arith.addf %319, %320 : vector<2x32xf32>
    %322 = math.tanh %321 : vector<2x32xf32>
    %323 = arith.mulf %318, %322 : vector<2x32xf32>
    %c2_i32_78 = arith.constant 2 : i32
    %324 = arith.muli %c4_i32, %c2_i32_78 : i32
    %325 = arith.index_cast %324 : i32 to index
    %c0_79 = arith.constant 0 : index
    %326 = vector.load %arg12[%325, %c0_79] : memref<16x32xf32, #tpu.memory_space<vmem>>, vector<2x32xf32>
    tpu.vector_store %arg12[%325, %c0_79], %323 {strides = array<i32>} : memref<16x32xf32, #tpu.memory_space<vmem>>, vector<2x32xf32>,
    %c5_i32 = arith.constant 5 : i32
    %cst_80 = arith.constant dense<0.000000e+00> : vector<2x160xf32>
    %327 = tpu.matmul %323, %11, %cst_80 {dimension_numbers = #tpu.dot_dimension_numbers<[1], [0], [0], [1], [0, 0, 1, 1], [], []>} : vector<2x32xf32>, vector<32x160xf32>, vector<2x160xf32> -> vector<2x160xf32>
    %328 = vector.extract_strided_slice %327 {offsets = [0, 0], sizes = [2, 128], strides = [1, 1]} : vector<2x160xf32> to vector<2x128xf32>
    %329 = vector.extract_strided_slice %327 {offsets = [0, 128], sizes = [2, 32], strides = [1, 1]} : vector<2x160xf32> to vector<2x32xf32>
    %330 = vector.broadcast %12 : vector<1x32xf32> to vector<2x32xf32>
    %331 = arith.addf %329, %330 : vector<2x32xf32>
    %332 = vector.shape_cast %331 : vector<2x32xf32> to vector<2x1x32xf32>
    %333 = vector.broadcast %332 : vector<2x1x32xf32> to vector<2x8x32xf32>
    %334 = arith.addf %6, %333 : vector<2x8x32xf32>
    %335 = math.tanh %334 : vector<2x8x32xf32>
    %336 = vector.shape_cast %13 : vector<1x32xf32> to vector<1x1x32xf32>
    %337 = vector.broadcast %336 : vector<1x1x32xf32> to vector<2x8x32xf32>
    %338 = arith.mulf %335, %337 : vector<2x8x32xf32>
    %cst_81 = arith.constant dense<0.000000e+00> : vector<2x8xf32>
    %339 = vector.multi_reduction <add>, %338, %cst_81 [2] : vector<2x8x32xf32> to vector<2x8xf32>
    %cst_82 = arith.constant dense<0xFF800000> : vector<2xf32>
    %340 = vector.multi_reduction <maximumf>, %339, %cst_82 [1] : vector<2x8xf32> to vector<2xf32>
    %341 = vector.shape_cast %340 : vector<2xf32> to vector<2x1xf32>
    %342 = vector.broadcast %341 : vector<2x1xf32> to vector<2x8xf32>
    %343 = arith.subf %339, %342 : vector<2x8xf32>
    %344 = math.exp %343 : vector<2x8xf32>
    %cst_83 = arith.constant dense<0.000000e+00> : vector<2xf32>
    %345 = vector.multi_reduction <add>, %344, %cst_83 [1] : vector<2x8xf32> to vector<2xf32>
    %346 = vector.shape_cast %345 : vector<2xf32> to vector<2x1xf32>
    %347 = tpu.reciprocal %346 {approx = true} : vector<2x1xf32> -> vector<2x1xf32>
    %348 = vector.broadcast %347 : vector<2x1xf32> to vector<2x8xf32>
    %349 = arith.mulf %344, %348 : vector<2x8xf32>
    %350 = vector.shape_cast %349 : vector<2x8xf32> to vector<2x8x1xf32>
    %351 = vector.broadcast %350 : vector<2x8x1xf32> to vector<2x8x128xf32>
    %352 = arith.mulf %351, %4 : vector<2x8x128xf32>
    %cst_84 = arith.constant dense<0.000000e+00> : vector<2x128xf32>
    %353 = vector.multi_reduction <add>, %352, %cst_84 [1] : vector<2x8x128xf32> to vector<2x128xf32>
    %354 = arith.addf %353, %328 : vector<2x128xf32>
    %c2_i32_85 = arith.constant 2 : i32
    %355 = arith.muli %c5_i32, %c2_i32_85 : i32
    %356 = arith.index_cast %355 : i32 to index
    %c0_86 = arith.constant 0 : index
    %357 = vector.load %arg11[%356, %c0_86] : memref<16x128xf32, #tpu.memory_space<vmem>>, vector<2x128xf32>
    %358 = arith.addf %354, %357 : vector<2x128xf32>
    %359 = vector.broadcast %14 : vector<1x128xf32> to vector<2x128xf32>
    %360 = arith.addf %358, %359 : vector<2x128xf32>
    %361 = vector.extract_strided_slice %360 {offsets = [0, 0], sizes = [2, 32], strides = [1, 1]} : vector<2x128xf32> to vector<2x32xf32>
    %362 = arith.negf %361 : vector<2x32xf32>
    %363 = math.exp %362 : vector<2x32xf32>
    %cst_87 = arith.constant 1.000000e+00 : f32
    %364 = vector.broadcast %cst_87 : f32 to vector<2x32xf32>
    %365 = arith.addf %364, %363 : vector<2x32xf32>
    %366 = arith.divf %364, %365 : vector<2x32xf32>
    %367 = vector.extract_strided_slice %360 {offsets = [0, 32], sizes = [2, 32], strides = [1, 1]} : vector<2x128xf32> to vector<2x32xf32>
    %368 = arith.negf %367 : vector<2x32xf32>
    %369 = math.exp %368 : vector<2x32xf32>
    %cst_88 = arith.constant 1.000000e+00 : f32
    %370 = vector.broadcast %cst_88 : f32 to vector<2x32xf32>
    %371 = arith.addf %370, %369 : vector<2x32xf32>
    %372 = arith.divf %370, %371 : vector<2x32xf32>
    %373 = vector.extract_strided_slice %360 {offsets = [0, 64], sizes = [2, 32], strides = [1, 1]} : vector<2x128xf32> to vector<2x32xf32>
    %374 = math.tanh %373 : vector<2x32xf32>
    %375 = vector.extract_strided_slice %360 {offsets = [0, 96], sizes = [2, 32], strides = [1, 1]} : vector<2x128xf32> to vector<2x32xf32>
    %376 = arith.negf %375 : vector<2x32xf32>
    %377 = math.exp %376 : vector<2x32xf32>
    %cst_89 = arith.constant 1.000000e+00 : f32
    %378 = vector.broadcast %cst_89 : f32 to vector<2x32xf32>
    %379 = arith.addf %378, %377 : vector<2x32xf32>
    %380 = arith.divf %378, %379 : vector<2x32xf32>
    %381 = arith.mulf %372, %321 : vector<2x32xf32>
    %382 = arith.mulf %366, %374 : vector<2x32xf32>
    %383 = arith.addf %381, %382 : vector<2x32xf32>
    %384 = math.tanh %383 : vector<2x32xf32>
    %385 = arith.mulf %380, %384 : vector<2x32xf32>
    %c2_i32_90 = arith.constant 2 : i32
    %386 = arith.muli %c5_i32, %c2_i32_90 : i32
    %387 = arith.index_cast %386 : i32 to index
    %c0_91 = arith.constant 0 : index
    %388 = vector.load %arg12[%387, %c0_91] : memref<16x32xf32, #tpu.memory_space<vmem>>, vector<2x32xf32>
    tpu.vector_store %arg12[%387, %c0_91], %385 {strides = array<i32>} : memref<16x32xf32, #tpu.memory_space<vmem>>, vector<2x32xf32>,
    %c6_i32 = arith.constant 6 : i32
    %cst_92 = arith.constant dense<0.000000e+00> : vector<2x160xf32>
    %389 = tpu.matmul %385, %11, %cst_92 {dimension_numbers = #tpu.dot_dimension_numbers<[1], [0], [0], [1], [0, 0, 1, 1], [], []>} : vector<2x32xf32>, vector<32x160xf32>, vector<2x160xf32> -> vector<2x160xf32>
    %390 = vector.extract_strided_slice %389 {offsets = [0, 0], sizes = [2, 128], strides = [1, 1]} : vector<2x160xf32> to vector<2x128xf32>
    %391 = vector.extract_strided_slice %389 {offsets = [0, 128], sizes = [2, 32], strides = [1, 1]} : vector<2x160xf32> to vector<2x32xf32>
    %392 = vector.broadcast %12 : vector<1x32xf32> to vector<2x32xf32>
    %393 = arith.addf %391, %392 : vector<2x32xf32>
    %394 = vector.shape_cast %393 : vector<2x32xf32> to vector<2x1x32xf32>
    %395 = vector.broadcast %394 : vector<2x1x32xf32> to vector<2x8x32xf32>
    %396 = arith.addf %6, %395 : vector<2x8x32xf32>
    %397 = math.tanh %396 : vector<2x8x32xf32>
    %398 = vector.shape_cast %13 : vector<1x32xf32> to vector<1x1x32xf32>
    %399 = vector.broadcast %398 : vector<1x1x32xf32> to vector<2x8x32xf32>
    %400 = arith.mulf %397, %399 : vector<2x8x32xf32>
    %cst_93 = arith.constant dense<0.000000e+00> : vector<2x8xf32>
    %401 = vector.multi_reduction <add>, %400, %cst_93 [2] : vector<2x8x32xf32> to vector<2x8xf32>
    %cst_94 = arith.constant dense<0xFF800000> : vector<2xf32>
    %402 = vector.multi_reduction <maximumf>, %401, %cst_94 [1] : vector<2x8xf32> to vector<2xf32>
    %403 = vector.shape_cast %402 : vector<2xf32> to vector<2x1xf32>
    %404 = vector.broadcast %403 : vector<2x1xf32> to vector<2x8xf32>
    %405 = arith.subf %401, %404 : vector<2x8xf32>
    %406 = math.exp %405 : vector<2x8xf32>
    %cst_95 = arith.constant dense<0.000000e+00> : vector<2xf32>
    %407 = vector.multi_reduction <add>, %406, %cst_95 [1] : vector<2x8xf32> to vector<2xf32>
    %408 = vector.shape_cast %407 : vector<2xf32> to vector<2x1xf32>
    %409 = tpu.reciprocal %408 {approx = true} : vector<2x1xf32> -> vector<2x1xf32>
    %410 = vector.broadcast %409 : vector<2x1xf32> to vector<2x8xf32>
    %411 = arith.mulf %406, %410 : vector<2x8xf32>
    %412 = vector.shape_cast %411 : vector<2x8xf32> to vector<2x8x1xf32>
    %413 = vector.broadcast %412 : vector<2x8x1xf32> to vector<2x8x128xf32>
    %414 = arith.mulf %413, %4 : vector<2x8x128xf32>
    %cst_96 = arith.constant dense<0.000000e+00> : vector<2x128xf32>
    %415 = vector.multi_reduction <add>, %414, %cst_96 [1] : vector<2x8x128xf32> to vector<2x128xf32>
    %416 = arith.addf %415, %390 : vector<2x128xf32>
    %c2_i32_97 = arith.constant 2 : i32
    %417 = arith.muli %c6_i32, %c2_i32_97 : i32
    %418 = arith.index_cast %417 : i32 to index
    %c0_98 = arith.constant 0 : index
    %419 = vector.load %arg11[%418, %c0_98] : memref<16x128xf32, #tpu.memory_space<vmem>>, vector<2x128xf32>
    %420 = arith.addf %416, %419 : vector<2x128xf32>
    %421 = vector.broadcast %14 : vector<1x128xf32> to vector<2x128xf32>
    %422 = arith.addf %420, %421 : vector<2x128xf32>
    %423 = vector.extract_strided_slice %422 {offsets = [0, 0], sizes = [2, 32], strides = [1, 1]} : vector<2x128xf32> to vector<2x32xf32>
    %424 = arith.negf %423 : vector<2x32xf32>
    %425 = math.exp %424 : vector<2x32xf32>
    %cst_99 = arith.constant 1.000000e+00 : f32
    %426 = vector.broadcast %cst_99 : f32 to vector<2x32xf32>
    %427 = arith.addf %426, %425 : vector<2x32xf32>
    %428 = arith.divf %426, %427 : vector<2x32xf32>
    %429 = vector.extract_strided_slice %422 {offsets = [0, 32], sizes = [2, 32], strides = [1, 1]} : vector<2x128xf32> to vector<2x32xf32>
    %430 = arith.negf %429 : vector<2x32xf32>
    %431 = math.exp %430 : vector<2x32xf32>
    %cst_100 = arith.constant 1.000000e+00 : f32
    %432 = vector.broadcast %cst_100 : f32 to vector<2x32xf32>
    %433 = arith.addf %432, %431 : vector<2x32xf32>
    %434 = arith.divf %432, %433 : vector<2x32xf32>
    %435 = vector.extract_strided_slice %422 {offsets = [0, 64], sizes = [2, 32], strides = [1, 1]} : vector<2x128xf32> to vector<2x32xf32>
    %436 = math.tanh %435 : vector<2x32xf32>
    %437 = vector.extract_strided_slice %422 {offsets = [0, 96], sizes = [2, 32], strides = [1, 1]} : vector<2x128xf32> to vector<2x32xf32>
    %438 = arith.negf %437 : vector<2x32xf32>
    %439 = math.exp %438 : vector<2x32xf32>
    %cst_101 = arith.constant 1.000000e+00 : f32
    %440 = vector.broadcast %cst_101 : f32 to vector<2x32xf32>
    %441 = arith.addf %440, %439 : vector<2x32xf32>
    %442 = arith.divf %440, %441 : vector<2x32xf32>
    %443 = arith.mulf %434, %383 : vector<2x32xf32>
    %444 = arith.mulf %428, %436 : vector<2x32xf32>
    %445 = arith.addf %443, %444 : vector<2x32xf32>
    %446 = math.tanh %445 : vector<2x32xf32>
    %447 = arith.mulf %442, %446 : vector<2x32xf32>
    %c2_i32_102 = arith.constant 2 : i32
    %448 = arith.muli %c6_i32, %c2_i32_102 : i32
    %449 = arith.index_cast %448 : i32 to index
    %c0_103 = arith.constant 0 : index
    %450 = vector.load %arg12[%449, %c0_103] : memref<16x32xf32, #tpu.memory_space<vmem>>, vector<2x32xf32>
    tpu.vector_store %arg12[%449, %c0_103], %447 {strides = array<i32>} : memref<16x32xf32, #tpu.memory_space<vmem>>, vector<2x32xf32>,
    %c7_i32 = arith.constant 7 : i32
    %cst_104 = arith.constant dense<0.000000e+00> : vector<2x160xf32>
    %451 = tpu.matmul %447, %11, %cst_104 {dimension_numbers = #tpu.dot_dimension_numbers<[1], [0], [0], [1], [0, 0, 1, 1], [], []>} : vector<2x32xf32>, vector<32x160xf32>, vector<2x160xf32> -> vector<2x160xf32>
    %452 = vector.extract_strided_slice %451 {offsets = [0, 0], sizes = [2, 128], strides = [1, 1]} : vector<2x160xf32> to vector<2x128xf32>
    %453 = vector.extract_strided_slice %451 {offsets = [0, 128], sizes = [2, 32], strides = [1, 1]} : vector<2x160xf32> to vector<2x32xf32>
    %454 = vector.broadcast %12 : vector<1x32xf32> to vector<2x32xf32>
    %455 = arith.addf %453, %454 : vector<2x32xf32>
    %456 = vector.shape_cast %455 : vector<2x32xf32> to vector<2x1x32xf32>
    %457 = vector.broadcast %456 : vector<2x1x32xf32> to vector<2x8x32xf32>
    %458 = arith.addf %6, %457 : vector<2x8x32xf32>
    %459 = math.tanh %458 : vector<2x8x32xf32>
    %460 = vector.shape_cast %13 : vector<1x32xf32> to vector<1x1x32xf32>
    %461 = vector.broadcast %460 : vector<1x1x32xf32> to vector<2x8x32xf32>
    %462 = arith.mulf %459, %461 : vector<2x8x32xf32>
    %cst_105 = arith.constant dense<0.000000e+00> : vector<2x8xf32>
    %463 = vector.multi_reduction <add>, %462, %cst_105 [2] : vector<2x8x32xf32> to vector<2x8xf32>
    %cst_106 = arith.constant dense<0xFF800000> : vector<2xf32>
    %464 = vector.multi_reduction <maximumf>, %463, %cst_106 [1] : vector<2x8xf32> to vector<2xf32>
    %465 = vector.shape_cast %464 : vector<2xf32> to vector<2x1xf32>
    %466 = vector.broadcast %465 : vector<2x1xf32> to vector<2x8xf32>
    %467 = arith.subf %463, %466 : vector<2x8xf32>
    %468 = math.exp %467 : vector<2x8xf32>
    %cst_107 = arith.constant dense<0.000000e+00> : vector<2xf32>
    %469 = vector.multi_reduction <add>, %468, %cst_107 [1] : vector<2x8xf32> to vector<2xf32>
    %470 = vector.shape_cast %469 : vector<2xf32> to vector<2x1xf32>
    %471 = tpu.reciprocal %470 {approx = true} : vector<2x1xf32> -> vector<2x1xf32>
    %472 = vector.broadcast %471 : vector<2x1xf32> to vector<2x8xf32>
    %473 = arith.mulf %468, %472 : vector<2x8xf32>
    %474 = vector.shape_cast %473 : vector<2x8xf32> to vector<2x8x1xf32>
    %475 = vector.broadcast %474 : vector<2x8x1xf32> to vector<2x8x128xf32>
    %476 = arith.mulf %475, %4 : vector<2x8x128xf32>
    %cst_108 = arith.constant dense<0.000000e+00> : vector<2x128xf32>
    %477 = vector.multi_reduction <add>, %476, %cst_108 [1] : vector<2x8x128xf32> to vector<2x128xf32>
    %478 = arith.addf %477, %452 : vector<2x128xf32>
    %c2_i32_109 = arith.constant 2 : i32
    %479 = arith.muli %c7_i32, %c2_i32_109 : i32
    %480 = arith.index_cast %479 : i32 to index
    %c0_110 = arith.constant 0 : index
    %481 = vector.load %arg11[%480, %c0_110] : memref<16x128xf32, #tpu.memory_space<vmem>>, vector<2x128xf32>
    %482 = arith.addf %478, %481 : vector<2x128xf32>
    %483 = vector.broadcast %14 : vector<1x128xf32> to vector<2x128xf32>
    %484 = arith.addf %482, %483 : vector<2x128xf32>
    %485 = vector.extract_strided_slice %484 {offsets = [0, 0], sizes = [2, 32], strides = [1, 1]} : vector<2x128xf32> to vector<2x32xf32>
    %486 = arith.negf %485 : vector<2x32xf32>
    %487 = math.exp %486 : vector<2x32xf32>
    %cst_111 = arith.constant 1.000000e+00 : f32
    %488 = vector.broadcast %cst_111 : f32 to vector<2x32xf32>
    %489 = arith.addf %488, %487 : vector<2x32xf32>
    %490 = arith.divf %488, %489 : vector<2x32xf32>
    %491 = vector.extract_strided_slice %484 {offsets = [0, 32], sizes = [2, 32], strides = [1, 1]} : vector<2x128xf32> to vector<2x32xf32>
    %492 = arith.negf %491 : vector<2x32xf32>
    %493 = math.exp %492 : vector<2x32xf32>
    %cst_112 = arith.constant 1.000000e+00 : f32
    %494 = vector.broadcast %cst_112 : f32 to vector<2x32xf32>
    %495 = arith.addf %494, %493 : vector<2x32xf32>
    %496 = arith.divf %494, %495 : vector<2x32xf32>
    %497 = vector.extract_strided_slice %484 {offsets = [0, 64], sizes = [2, 32], strides = [1, 1]} : vector<2x128xf32> to vector<2x32xf32>
    %498 = math.tanh %497 : vector<2x32xf32>
    %499 = vector.extract_strided_slice %484 {offsets = [0, 96], sizes = [2, 32], strides = [1, 1]} : vector<2x128xf32> to vector<2x32xf32>
    %500 = arith.negf %499 : vector<2x32xf32>
    %501 = math.exp %500 : vector<2x32xf32>
    %cst_113 = arith.constant 1.000000e+00 : f32
    %502 = vector.broadcast %cst_113 : f32 to vector<2x32xf32>
    %503 = arith.addf %502, %501 : vector<2x32xf32>
    %504 = arith.divf %502, %503 : vector<2x32xf32>
    %505 = arith.mulf %496, %445 : vector<2x32xf32>
    %506 = arith.mulf %490, %498 : vector<2x32xf32>
    %507 = arith.addf %505, %506 : vector<2x32xf32>
    %508 = math.tanh %507 : vector<2x32xf32>
    %509 = arith.mulf %504, %508 : vector<2x32xf32>
    %c2_i32_114 = arith.constant 2 : i32
    %510 = arith.muli %c7_i32, %c2_i32_114 : i32
    %511 = arith.index_cast %510 : i32 to index
    %c0_115 = arith.constant 0 : index
    %512 = vector.load %arg12[%511, %c0_115] : memref<16x32xf32, #tpu.memory_space<vmem>>, vector<2x32xf32>
    tpu.vector_store %arg12[%511, %c0_115], %509 {strides = array<i32>} : memref<16x32xf32, #tpu.memory_space<vmem>>, vector<2x32xf32>,
    %c8_i32 = arith.constant 8 : i32
    %c0_116 = arith.constant 0 : index
    %c0_117 = arith.constant 0 : index
    %513 = vector.load %arg12[%c0_116, %c0_117] : memref<16x32xf32, #tpu.memory_space<vmem>>, vector<16x32xf32>
    %c0_118 = arith.constant 0 : index
    %c0_119 = arith.constant 0 : index
    %514 = vector.load %arg8[%c0_118, %c0_119] : memref<32x128xf32, #tpu.memory_space<vmem>>, vector<32x128xf32>
    %cst_120 = arith.constant dense<0.000000e+00> : vector<16x128xf32>
    %515 = tpu.matmul %513, %514, %cst_120 {dimension_numbers = #tpu.dot_dimension_numbers<[1], [0], [0], [1], [0, 0, 1, 1], [], []>} : vector<16x32xf32>, vector<32x128xf32>, vector<16x128xf32> -> vector<16x128xf32>
    %c0_121 = arith.constant 0 : index
    %c0_122 = arith.constant 0 : index
    %516 = vector.load %arg9[%c0_121, %c0_122] : memref<1x128xf32, #tpu.memory_space<vmem>>, vector<1x128xf32>
    %517 = vector.broadcast %516 : vector<1x128xf32> to vector<16x128xf32>
    %518 = arith.addf %515, %517 : vector<16x128xf32>
    %c0_123 = arith.constant 0 : index
    %c0_124 = arith.constant 0 : index
    %519 = vector.load %arg10[%c0_123, %c0_124] : memref<16x128xf32, #tpu.memory_space<vmem>>, vector<16x128xf32>
    tpu.vector_store %arg10[%c0_123, %c0_124], %518 {strides = array<i32>} : memref<16x128xf32, #tpu.memory_space<vmem>>, vector<16x128xf32>,
    return
  }
}

</mosaic_0001>

<bundles_post_ra>
// kernel: tpu_custom_call.1
= control target key start
LH: loop header
LB: loop body
LE: loop exit
PB: predicated region body
PF: predicated region fallthrough
CT: control target
= control target key end

     0   :  { %15 = vsyncpa [#allocation5], 0  ;;  %s3811_s0 = inlined_call_operand.hbm [shape: f32[16,32], index: 0, kind: input, shape index: {}]   ;;  %s3812_s1 = inlined_call_operand.hbm [shape: f32[16,32], index: 1, kind: input, shape index: {}]   ;;  %s3813_s2 = inlined_call_operand.hbm [shape: f32[32,160], index: 2, kind: input, shape index: {}]   ;;  %s3814_s3 = inlined_call_operand.hbm [shape: f32[32,160], index: 3, kind: input, shape index: {}]   ;;  %s3815_s4 = inlined_call_operand.vmem [shape: f32[1,32], index: 4, kind: input, shape index: {}]   ;;  %s3816_s5 = inlined_call_operand.vmem [shape: f32[1,32], index: 5, kind: input, shape index: {}]   ;;  %s3817_s6 = inlined_call_operand.hbm [shape: f32[32,128], index: 6, kind: input, shape index: {}]   ;;  %s3818_s7 = inlined_call_operand.vmem [shape: f32[1,128], index: 7, kind: input, shape index: {}]   ;;  %s3819_s8 = inlined_call_operand.hbm [shape: f32[32,128], index: 8, kind: input, shape index: {}]   ;;  %s3820_s9 = inlined_call_operand.vmem [shape: f32[1,128], index: 9, kind: input, shape index: {}]   ;;  %s3821_s10 = inlined_call_operand.hbm [shape: f32[16,128], index: 10, kind: output, shape index: {}]  }
   0x1   :  { %16 = vsyncpa [#allocation8], 0 }
   0x2   :  { %17 = vsyncpa [#allocation11], 0 }
   0x3   :  { %18 = vsyncpa [#allocation14], 0 }
   0x4   :  { %19 = vsyncpa [#allocation6], 0  ;;  %s3153_s13 = smov [#allocation7]  }
   0x5   :  { %s37_s14 = sshll.u32 %s3153_s13, 4  ;;  %s38_s14 = int_to_ptr.vmem [resolvable:$true] %s37_s14 }
   0x6   :  { %s3011_s15 = scalar_lea.vmem %s38_s14, 256  ;;  %p3016_p1 = scmp.lt.s32.totalorder %s38_s14, %s38_s14 }
   0x7   :  { %p3012_p0 = scmp.ne.s32.totalorder %s38_s14, %s3011_s15  ;;  %p3017_p2 = scmp.lt.s32.totalorder %s3011_s15, %s3011_s15 }
   0x9   :  { %p3018_p3 = por %p3017_p2, %p3016_p1 }
   0xb   :  { %p3019_p4 = pnand %p3018_p3, %p3012_p0 }
   0xd   :  { %3022 = shalt.err (!%p3019_p4)
}
   0xe   :  { %s3154_s16 = smov 128   ;;  %s3155_s17 = smov 8  }
   0xf   :  { %43 = dma.hbm_to_vmem [thread:$0]  %s3812_s1, 256, %s38_s14, [#allocation8], %s3154_s16, %s3154_s16, %s3155_s17  }
  0x10   :  { %s3156_s20 = smov [#allocation10]   ;;  %s3157_s22 = smov [#allocation4]  }
  0x11   :  { %s61_s21 = sshll.u32 %s3156_s20, 4  ;;  %s25_s23 = sshll.u32 %s3157_s22, 4  ;;  %s62_s21 = int_to_ptr.vmem [resolvable:$true] %s61_s21  ;;  %s26_s23 = int_to_ptr.vmem [resolvable:$true] %s25_s23 }
  0x12   :  { %s3031_s24 = scalar_lea.vmem %s62_s21, 1024  ;;  %p3036_p6 = scmp.lt.s32.totalorder %s62_s21, %s62_s21 }
  0x13   :  { %p3032_p5 = scmp.ne.s32.totalorder %s62_s21, %s3031_s24  ;;  %p3037_p7 = scmp.lt.s32.totalorder %s3031_s24, %s3031_s24 }
  0x15   :  { %p3038_p8 = por %p3037_p7, %p3036_p6 }
  0x17   :  { %p3039_p9 = pnand %p3038_p8, %p3032_p5 }
  0x19   :  { %3042 = shalt.err (!%p3039_p9)
}
  0x1a   :  { %s3158_s25 = smov 256   ;;  %s3159_s26 = smov 16  }
  0x1b   :  { %67 = dma.hbm_to_vmem [thread:$0]  %s3814_s3, 1024, %s62_s21, [#allocation11], %s3158_s25, %s3158_s25, %s3159_s26  }
  0x1c   :  { %s3051_s1 = scalar_lea.vmem %s26_s23, 256  ;;  %p3056_p11 = scmp.lt.s32.totalorder %s26_s23, %s26_s23 }
  0x1d   :  { %p3052_p10 = scmp.ne.s32.totalorder %s26_s23, %s3051_s1  ;;  %p3057_p12 = scmp.lt.s32.totalorder %s3051_s1, %s3051_s1 }
  0x1f   :  { %p3058_p13 = por %p3057_p12, %p3056_p11 }
  0x21   :  { %p3059_p0 = pnand %p3058_p13, %p3052_p10 }
  0x23   :  { %3062 = shalt.err (!%p3059_p0)
}
  0x24   :  { %31 = dma.hbm_to_vmem [thread:$0]  %s3811_s0, 256, %s26_s23, [#allocation5], %s3154_s16, %s3154_s16, %s3155_s17  }
  0x25   :  { %s3160_s11 = smov [#allocation9]   ;;  %s3161_s13 = smov [#allocation12]  }
  0x26   :  { %s49_s12 = sshll.u32 %s3160_s11, 4  ;;  %s77_s3 = sshll.u32 %s3161_s13, 4  ;;  %s50_s12 = int_to_ptr.vmem [resolvable:$true] %s49_s12  ;;  %s78_s3 = int_to_ptr.vmem [resolvable:$true] %s77_s3 }
  0x27   :  { %s3071_s14 = scalar_lea.vmem %s50_s12, 1024  ;;  %p3076_p2 = scmp.lt.s32.totalorder %s50_s12, %s50_s12 }
  0x28   :  { %p3072_p1 = scmp.ne.s32.totalorder %s50_s12, %s3071_s14  ;;  %p3077_p3 = scmp.lt.s32.totalorder %s3071_s14, %s3071_s14 }
  0x2a   :  { %p3078_p4 = por %p3077_p3, %p3076_p2 }
  0x2c   :  { %p3079_p5 = pnand %p3078_p4, %p3072_p1 }
  0x2e   :  { %3082 = shalt.err (!%p3079_p5)
}
  0x2f   :  { %55 = dma.hbm_to_vmem [thread:$0]  %s3813_s2, 1024, %s50_s12, [#allocation8], %s3158_s25, %s3158_s25, %s3159_s26  }
  0x30   :  { %s3091_s19 = scalar_lea.vmem %s78_s3, 512  ;;  %p3096_p7 = scmp.lt.s32.totalorder %s78_s3, %s78_s3 }
  0x31   :  { %p3092_p6 = scmp.ne.s32.totalorder %s78_s3, %s3091_s19  ;;  %p3097_p8 = scmp.lt.s32.totalorder %s3091_s19, %s3091_s19 }
  0x33   :  { %p3098_p9 = por %p3097_p8, %p3096_p7 }
  0x35   :  { %p3099_p10 = pnand %p3098_p9, %p3092_p6 }
  0x37   :  { %3102 = shalt.err (!%p3099_p10)
}
  0x38   :  { %83 = dma.hbm_to_vmem [thread:$0]  %s3817_s6, 512, %s78_s3, [#allocation11], %s3154_s16, %s3154_s16, %s3155_s17  }
  0x39   :  { %s3162_s21 = smov [#allocation13]  }
  0x3a   :  { %s91_s22 = sshll.u32 %s3162_s21, 4  ;;  %s92_s22 = int_to_ptr.vmem [resolvable:$true] %s91_s22 }
  0x3b   :  { %s3111_s23 = scalar_lea.vmem %s92_s22, 512  ;;  %p3116_p12 = scmp.lt.s32.totalorder %s92_s22, %s92_s22 }
  0x3c   :  { %p3112_p11 = scmp.ne.s32.totalorder %s92_s22, %s3111_s23  ;;  %p3117_p13 = scmp.lt.s32.totalorder %s3111_s23, %s3111_s23 }
  0x3e   :  { %p3118_p0 = por %p3117_p13, %p3116_p12 }
  0x40   :  { %p3119_p1 = pnand %p3118_p0, %p3112_p11 }
  0x42   :  { %3122 = shalt.err (!%p3119_p1)
}
  0x43   :  { %97 = dma.hbm_to_vmem [thread:$0]  %s3819_s8, 512, %s92_s22, [#allocation14], %s3154_s16, %s3154_s16, %s3155_s17  }
  0x44   :  { %3143 = dma.done.wait [#allocation5], 256  }
  0x45   :  { %3144 = vsyncadd [#allocation5], 4294967040 }
  0x46   :  { %3145 = dma.done.wait [#allocation8], 1280  }
  0x47   :  { %3146 = vsyncadd [#allocation8], 4294966016 }
  0x48   :  { %3147 = dma.done.wait [#allocation11], 1536  }
  0x49   :  { %3148 = vsyncadd [#allocation11], 4294965760 }
  0x4a   :  { %3149 = dma.done.wait [#allocation14], 512  }
  0x4b   :  { %3150 = vsyncadd [#allocation14], 4294966784  ;;  %v3163_v0 = vmov 0.0   ;;  %v127_v1 = vld [vmem:[#allocation9 + $0x38] sm:$0xff]  ;;  %v126_v2 = vld [vmem:[#allocation9 + $0x30] sm:$0xff]  ;;  %vm128_vm0 = vcmask 261120   ;;  %v397_v22 = vlaneseq }
  0x4c   :  { %199 = vmatprep.mubr.f32.mxu0 %v3163_v0  ;;  %v125_v3 = vld [vmem:[#allocation9 + $0x28] sm:$0xff]  ;;  %159 = vmatprep.subr.mxu0 %v127_v1  ;;  %v124_v4 = vld [vmem:[#allocation9 + $0x20] sm:$0xff]  ;;  %v123_v5 = vld [vmem:[#allocation9 + $0x18] sm:$0xff]  ;;  %v3164_v20 = vmov 1966171168   ;;  %vm456_vm1 = vcmask 1041409  }
  0x4d   :  { %160 = vmatpush1.msra.mxu0 %v126_v2  ;;  %v122_v6 = vld [vmem:[#allocation9 + $0x10] sm:$0xff]  ;;  %v121_v7 = vld [vmem:[#allocation9 + $0x8] sm:$0xff]  ;;  %v120_v8 = vld [vmem:[#allocation9] sm:$0xff]  ;;  %v395_v21 = vunpack.c.l.s4 %v3164_v20  ;;  %v398_v26 = vshrl.u32 %v397_v22, 7  ;;  %v447_v49 = vand.u32 127, %v397_v22  ;;  %vm459_vm2 = vcmask 58368  }
  0x4e   :  { %161 = vmatprep.subr.mxu0 %v125_v3  ;;  %v118_v9 = vld [vmem:[#allocation4] sm:$0xff]  ;;  %v3255_v10 = vld [vmem:[#allocation10 + $0x38] sm:$0xff]  ;;  %v3257_v11 = vld [vmem:[#allocation10 + $0x30] sm:$0xff]  ;;  %v3165_v57 = vmov 0   ;;  %s3166_s1 = smov 64   ;;  %s3167_s29 = smov 32  }
  0x4f   :  { %162 = vmatpush1.msra.mxu0 %v124_v4  ;;  %v3259_v12 = vld [vmem:[#allocation10 + $0x28] sm:$0xff]  ;;  %v3263_v13 = vld [vmem:[#allocation10 + $0x20] sm:$0xff]  ;;  %v3267_v15 = vld [vmem:[#allocation10 + $0x18] sm:$0xff]  ;;  %v396_v25 = vunpack.c.0.s8 %v395_v21  ;;  %v3313_v34 = vsub.s32 0, %v398_v26  ;;  %v3330_v51 = vsub.s32 %v447_v49, %v398_v26  ;;  %2784 = vset.pattern.permute.xlu0 %v3165_v57  ;;  %v3336_v58 = vsub.s32 1, %v398_v26  ;;  %s3168_s14 = smov [#allocation15]  }
  0x50   :  { %163 = vmatprep.subr.mxu0 %v123_v5  ;;  %v119_v14 = vld [vmem:[#allocation4 + $0x8] sm:$0xff]  ;;  %v3270_v16 = vld [vmem:[#allocation10 + $0x10] sm:$0xff]  ;;  %v3277_v18 = vld [vmem:[#allocation10] sm:$0xff]  ;;  %2783 = vset.pattern.permute.xlu1 %v3165_v57  ;;  %vm615_vm3 = vcmask 254976   ;;  %s2685_s15 = sshll.u32 %s3168_s14, 4  ;;  %s2686_s15 = int_to_ptr.vmem [resolvable:$true] %s2685_s15 }
  0x51   :  { %164 = vmatpush1.msra.mxu0 %v122_v6  ;;  %v3273_v17 = vld [vmem:[#allocation10 + $0x8] sm:$0xff]  ;;  %v3307_v29 = vld [vmem:[%s3815_s4] ss:$0 sm:$0xff]  ;;  %v3309_v30 = vsub.s32 %v396_v25, %v398_v26  ;;  %v217_v5 = vld [vmem:[#allocation12 + $0x18] sm:$0xff]  ;;  %s3123_s18 = scalar_lea.vmem %s2686_s15, 256  ;;  %p3128_p3 = scmp.lt.s32.totalorder %s2686_s15, %s2686_s15 }
  0x52   :  { %165 = vmatprep.subr.mxu0 %v121_v7  ;;  %v3324_v42 = vld [vmem:[%s3816_s5] ss:$0 sm:$0xff]  ;;  %v216_v6 = vld [vmem:[#allocation12 + $0x10] sm:$0xff]  ;;  %2745 = vmatprep.subr.mxu1 %v217_v5  ;;  %p3124_p2 = scmp.ne.s32.totalorder %s2686_s15, %s3123_s18  ;;  %p3129_p4 = scmp.lt.s32.totalorder %s3123_s18, %s3123_s18 }
  0x53   :  { %166 = vmatpush1.msra.mxu0 %v120_v8  ;;  %v212_v7 = vld [vmem:[#allocation7] sm:$0xff]  ;;  %2746 = vmatpush3.msra.mxu1 %v217_v5  ;;  %v215_v8 = vld [vmem:[#allocation12 + $0x8] sm:$0xff] }
  0x54   :  { %2700 = vmatmul.mubr.msk.f32.vlgmr.msra.gmra.mxu0 %vm128_vm0, %v118_v9  ;;  %339 = vmatprep.subr.mxu0 %v3255_v10  ;;  %v214_v9 = vld [vmem:[#allocation12] sm:$0xff]  ;;  %p3130_p5 = por %p3129_p4, %p3128_p3 }
  0x55   :  { %340 = vmatpush1.msra.mxu0 %v3257_v11  ;;  %205 = vmatprep.mubr.f32.mxu0 %v3163_v0 }
  0x56   :  { %341 = vmatprep.subr.mxu0 %v3259_v12  ;;  %2753 = vmatprep.mubr.msk.f32.mxu1 %vm128_vm0, %v212_v7  ;;  %p3131_p6 = pnand %p3130_p5, %p3124_p2 }
  0x57   :  { %342 = vmatpush1.msra.mxu0 %v3263_v13  ;;  %2747 = vmatprep.subr.mxu1 %v216_v6 }
  0x58   :  { %2701 = vmatmul.mubr.msk.f32.gmra.mxu0 %vm128_vm0, %v119_v14  ;;  %343 = vmatprep.subr.mxu0 %v3267_v15  ;;  %v213_v14 = vld [vmem:[#allocation7 + $0x8] sm:$0xff] }
  0x59   :  { %344 = vmatpush1.msra.mxu0 %v3270_v16  ;;  %379 = vmatprep.mubr.f32.mxu0 %v3163_v0 }
  0x5a   :  { %345 = vmatprep.subr.mxu0 %v3273_v17  ;;  %2748 = vmatpush3.msra.mxu1 %v216_v6 }
  0x5b   :  { %346 = vmatpush1.msra.mxu0 %v3277_v18  ;;  %2749 = vmatprep.subr.mxu1 %v215_v8 }
  0x5c   :  { %380 = vmatmul.mubr.f32.vlgmr.msra.gmra.mxu0 %v3163_v0  ;;  %924 = vmatprep.subr.mxu0 %v3255_v10 }
  0x5d   :  { %925 = vmatpush1.msra.mxu0 %v3257_v11  ;;  %964 = vmatprep.mubr.f32.mxu0 %v3163_v0 }
  0x5e   :  { %926 = vmatprep.subr.mxu0 %v3259_v12  ;;  %2750 = vmatpush3.msra.mxu1 %v215_v8 }
  0x5f   :  { %927 = vmatpush1.msra.mxu0 %v3263_v13  ;;  %2751 = vmatprep.subr.mxu1 %v214_v9 }
  0x60   :  { %928 = vmatprep.subr.mxu0 %v3267_v15  ;;  %2752 = vmatpush3.msra.mxu1 %v214_v9 }
  0x61   :  { %929 = vmatpush1.msra.mxu0 %v3270_v16  ;;  %2754 = vmatmul.mubr.msk.f32.vlgmr.msra.gmra.mxu1 %vm128_vm0, %v213_v14 }
  0x62   :  { %930 = vmatprep.subr.mxu0 %v3273_v17  ;;  %643 = vmatprep.subr.mxu1 %v3255_v10 }
  0x63   :  { %931 = vmatpush1.msra.mxu0 %v3277_v18  ;;  %644 = vmatpush1.msra.mxu1 %v3257_v11 }
  0x64   :  { %1486 = vmatprep.subr.mxu0 %v3255_v10  ;;  %683 = vmatprep.mubr.f32.mxu1 %v3163_v0 }
  0x65   :  { %645 = vmatprep.subr.mxu1 %v3259_v12 }
  0x66   :  { %646 = vmatpush1.msra.mxu1 %v3263_v13 }
  0x67   :  { %647 = vmatprep.subr.mxu1 %v3267_v15 }
  0x68   :  { %648 = vmatpush1.msra.mxu1 %v3270_v16 }
  0x69   :  { %649 = vmatprep.subr.mxu1 %v3273_v17 }
  0x6a   :  { %650 = vmatpush1.msra.mxu1 %v3277_v18 }
  0x6b   :  { %1205 = vmatprep.subr.mxu1 %v3255_v10 }
 0x114   :  { %v3294_v19 = vpop.f32.mrf.mxu0 }
 0x116   :  { %v3296_v23 = vpop.f32.mrf.mxu0 }
 0x118   :  { %v3298_v24 = vpop.f32.mrf.mxu0 }
 0x11a   :  { %v3300_v27 = vpop.f32.mrf.mxu0 }
 0x11c   :  { %v3302_v28 = vpop.f32.mrf.mxu0 }
 0x11e   :  { %v383_v31 = vpop.f32.mrf.mxu0 }
 0x11f   :  { %v392_v32 = vadd.f32 %v3307_v29, %v383_v31 }
 0x121   :  { %v400_v33 = vrot.slane %v392_v32, %v3309_v30 }
 0x123   :  { %v401_v35 = vcombine.high %v400_v33, %v400_v33  ;;  %v408_v36 = vrot.slane %v400_v33, %v3309_v30 }
 0x125   :  { %v415_v37 = vrot.slane %v401_v35, %v3309_v30  ;;  %v419_v38 = vrot.slane %v408_v36, %v3313_v34  ;;  %v2755_v36 = vpop.f32.mrf.mxu1 }
 0x126   :  { %300 = vst [vmem:[#allocation2 + $0x8] sm:$0xff] %v2755_v36 }
 0x127   :  { %v423_v39 = vrot.slane %v415_v37, %v3313_v34  ;;  %v426_v40 = vadd.f32 %v419_v38, %v3296_v23 }
 0x129   :  { %v427_v41 = vadd.f32 %v423_v39, %v3300_v27  ;;  %2785 = vtanh.f32 %v426_v40  ;;  %v290_v39 = vpop.f32.mrf.mxu1 }
 0x12a   :  { %299 = vst [vmem:[#allocation2] sm:$0xff] %v290_v39 }
 0x12b   :  { %2787 = vtanh.f32 %v427_v41 }
 0x136   :  { %v2786_v43 = vpop.eup %2785 }
 0x137   :  { %v436_v44 = vmul.f32 %v2786_v43, %v3324_v42 }
 0x138   :  { %v2788_v45 = vpop.eup %2787 }
 0x139   :  { %v438_v46 = vsel %vm128_vm0, %v436_v44, 0.0  ;;  %v437_v47 = vmul.f32 %v2788_v45, %v3324_v42 }
 0x13a   :  { %439 = vadd.xlane.f32.xlu0 %v438_v46 }
 0x13b   :  { %v441_v48 = vsel %vm128_vm0, %v437_v47, 0.0 }
 0x13e   :  { %442 = vadd.xlane.f32.xlu0 %v441_v48 }
 0x1c3   :  { %v440_v50 = vpop.xlane.xlu0 %439 }
 0x1c4   :  { %v451_v53 = vrot.slane %v440_v50, %v3330_v51 }
 0x1c7   :  { %v443_v52 = vpop.xlane.xlu0 %442 }
 0x1c8   :  { %v455_v54 = vrot.slane %v443_v52, %v3330_v51 }
 0x1ca   :  { %v457_v55 = vsel %vm456_vm1, %v455_v54, %v451_v53 }
 0x1cb   :  { %v460_v56 = vsel %vm459_vm2, %v457_v55, -inf  ;;  %v545_v55 = vld [vmem:[#allocation2] sm:$0x3] }
 0x1cc   :  { %461 = vmax.xlane.f32.xlu1 %v460_v56  ;;  %v540_v56 = vrot.slane %v3302_v28, 1 }
 0x255   :  { %v462_v59 = vpop.xlane.xlu1 %461 }
 0x256   :  { %v467_v60 = vrot.slane %v462_v59, %v3313_v34  ;;  %v471_v61 = vrot.slane %v462_v59, %v3336_v58 }
 0x258   :  { %v474_v62 = vsub.f32 %v440_v50, %v467_v60  ;;  %v475_v63 = vsub.f32 %v443_v52, %v471_v61 }
 0x25a   :  { %v476_v1 = vmul.f32 1.442695, %v474_v62  ;;  %v478_v2 = vmul.f32 1.442695, %v475_v63  ;;  %v547_v62 = vrot.slane %v545_v55, 1 }
 0x25b   :  { %v3364_v63 = vld [vmem:[%s3818_s7] ss:$0 sm:$0xff] }
 0x25c   :  { %2789 = vpow2.f32 %v476_v1 }
 0x25d   :  { %2791 = vpow2.f32 %v478_v2 }
 0x269   :  { %v2790_v3 = vpop.eup %2789 }
 0x26a   :  { %v2792_v4 = vpop.eup %2791  ;;  %483 = vperm.xlu1 %2783, %v2790_v3  }
 0x26b   :  { %486 = vperm.xlu0 %2784, %v2792_v4  }
 0x2e5   :  { %v484_v20 = vpop.permute.xlu1 %483 }
 0x2e6   :  { %v487_v21 = vpop.permute.xlu0 %486  ;;  %v491_v22 = vrot.slane %v484_v20, %v3330_v51 }
 0x2e7   :  { %v495_v25 = vrot.slane %v487_v21, %v3330_v51 }
 0x2e9   :  { %v496_v26 = vsel %vm456_vm1, %v495_v25, %v491_v22 }
 0x2ea   :  { %v498_v31 = vsel %vm459_vm2, %v496_v26, 0.0 }
 0x2eb   :  { %499 = vadd.xlane.f32.xlu1 %v498_v31 }
 0x374   :  { %v500_v32 = vpop.xlane.xlu1 %499 }
 0x375   :  { %2793 = vrcp.f32 %v500_v32 }
 0x382   :  { %v2794_v33 = vpop.eup %2793 }
 0x383   :  { %v510_v35 = vrot.slane %v2794_v33, %v3336_v58  ;;  %v506_v38 = vrot.slane %v2794_v33, %v3313_v34 }
 0x385   :  { %v514_v37 = vmul.f32 %v2792_v4, %v510_v35  ;;  %v513_v40 = vmul.f32 %v2790_v3, %v506_v38 }
 0x387   :  { %522 = vperm.xlu0 %2784, %v514_v37  }
 0x38b   :  { %517 = vperm.xlu0 %2784, %v513_v40  }
 0x402   :  { %v523_v41 = vpop.permute.xlu0 %522 }
 0x403   :  { %v526_v43 = vmul.f32 %v523_v41, %v3298_v24 }
 0x405   :  { %v533_v44 = vrot.slane %v526_v43, 4 }
 0x406   :  { %v518_v45 = vpop.permute.xlu0 %517 }
 0x407   :  { %v534_v46 = vadd.f32 %v533_v44, %v526_v43  ;;  %v525_v47 = vmul.f32 %v518_v45, %v3294_v19 }
 0x409   :  { %v535_v48 = vrot.slane %v534_v46, 2  ;;  %v527_v49 = vrot.slane %v525_v47, 4 }
 0x40b   :  { %v536_v50 = vadd.f32 %v535_v48, %v534_v46  ;;  %v528_v52 = vadd.f32 %v527_v49, %v525_v47 }
 0x40d   :  { %v537_v53 = vrot.slane %v536_v50, 1  ;;  %v529_v54 = vrot.slane %v528_v52, 2 }
 0x40f   :  { %v538_v57 = vadd.f32 %v537_v53, %v536_v50  ;;  %v530_v59 = vadd.f32 %v529_v54, %v528_v52 }
 0x411   :  { %v544_v60 = vadd.f32 %v540_v56, %v538_v57  ;;  %v531_v61 = vrot.slane %v530_v59, 1 }
 0x413   :  { %v532_v1 = vadd.f32 %v531_v61, %v530_v59  ;;  %v551_v2 = vadd.f32 %v547_v62, %v544_v60 }
 0x415   :  { %v543_v3 = vadd.f32 %v532_v1, %v3302_v28  ;;  %v559_v4 = vadd.f32 %v3364_v63, %v551_v2 }
 0x417   :  { %v550_v5 = vadd.f32 %v545_v55, %v543_v3  ;;  %2795 = vtanh.f32 %v559_v4  ;;  %v2708_v9 = vmul.f32 -1.442695, %v559_v4 }
 0x419   :  { %v558_v6 = vadd.f32 %v3364_v63, %v550_v5 }
 0x41b   :  { %2797 = vtanh.f32 %v558_v6  ;;  %v2707_v14 = vmul.f32 -1.442695, %v558_v6 }
 0x41c   :  { %2799 = vpow2.f32 %v2708_v9 }
 0x41d   :  { %2801 = vpow2.f32 %v2707_v14 }
 0x424   :  { %v2796_v7 = vpop.eup %2795 }
 0x425   :  { %580 = vrot.lane.b32.xlu1 %v2796_v7, %s3166_s1 }
 0x428   :  { %v2798_v8 = vpop.eup %2797 }
 0x429   :  { %578 = vrot.lane.b32.xlu0 %v2798_v8, %s3166_s1  ;;  %v2800_v20 = vpop.eup %2799 }
 0x42a   :  { %v567_v28 = vadd.f32 1.0, %v2800_v20  ;;  %v2802_v21 = vpop.eup %2801 }
 0x42b   :  { %v566_v22 = vadd.f32 1.0, %v2802_v21 }
 0x42c   :  { %2803 = vrcp.f32 %v567_v28 }
 0x42d   :  { %2805 = vrcp.f32 %v566_v22 }
 0x439   :  { %v2804_v25 = vpop.eup %2803 }
 0x43a   :  { %v2806_v32 = vpop.eup %2805  ;;  %v575_v36 = vmul.f32 0.0, %v2804_v25 }
 0x43b   :  { %v574_v39 = vmul.f32 0.0, %v2806_v32 }
 0x497   :  { %v581_v26 = vpop.permute.xlu1 %580 }
 0x498   :  { %v585_v31 = vmul.f32 %v2804_v25, %v581_v26 }
 0x49a   :  { %590 = vrot.lane.b32.xlu0 %v585_v31, %s3167_s29 }
 0x49b   :  { %v579_v33 = vpop.permute.xlu0 %578 }
 0x49c   :  { %v584_v35 = vmul.f32 %v2806_v32, %v579_v33 }
 0x49e   :  { %588 = vrot.lane.b32.xlu0 %v584_v35, %s3167_s29 }
 0x50c   :  { %v591_v37 = vpop.permute.xlu0 %590 }
 0x50d   :  { %v3373_v38 = vadd.f32 %v591_v37, %v575_v36 }
 0x50f   :  { %2807 = vtanh.f32 %v3373_v38 }
 0x510   :  { %v589_v40 = vpop.permute.xlu0 %588 }
 0x511   :  { %v3376_v41 = vadd.f32 %v589_v40, %v574_v39 }
 0x513   :  { %2809 = vtanh.f32 %v3376_v41 }
 0x51c   :  { %v2808_v43 = vpop.eup %2807 }
 0x51d   :  { %602 = vrot.lane.b32.xlu0 %v2808_v43, %s3166_s1 }
 0x520   :  { %v2810_v44 = vpop.eup %2809 }
 0x521   :  { %600 = vrot.lane.b32.xlu1 %v2810_v44, %s3166_s1 }
 0x58f   :  { %v603_v45 = vpop.permute.xlu0 %602 }
 0x590   :  { %v607_v46 = vmul.f32 %v2804_v25, %v603_v45 }
 0x592   :  { %v610_v48 = vrot.slane %v607_v46, 7 }
 0x593   :  { %v601_v47 = vpop.permute.xlu1 %600 }
 0x594   :  { %v606_v49 = vmul.f32 %v2806_v32, %v601_v47 }
 0x596   :  { %v611_v50 = vsel %vm456_vm1, %v610_v48, %v606_v49 }
 0x597   :  { %612 = vrot.lane.b32.xlu0 %v611_v50, %s3167_s29 }
 0x609   :  { %v613_v52 = vpop.permute.xlu0 %612 }
 0x60a   :  { %616 = vst.msk [vmem:[#allocation3] sm:$0x3] %vm615_vm3, %v613_v52  ;;  %2709 = vmatmul.mubr.msk.f32.vlgmr.msra.gmra.mxu1 %vm128_vm0, %v613_v52 }
 0x60b   :  { %1206 = vmatpush1.msra.mxu1 %v3257_v11  ;;  %1245 = vmatprep.mubr.f32.mxu1 %v3163_v0 }
 0x60c   :  { %1207 = vmatprep.subr.mxu1 %v3259_v12 }
 0x60d   :  { %1208 = vmatpush1.msra.mxu1 %v3263_v13 }
 0x60e   :  { %1209 = vmatprep.subr.mxu1 %v3267_v15 }
 0x60f   :  { %1210 = vmatpush1.msra.mxu1 %v3270_v16 }
 0x610   :  { %1211 = vmatprep.subr.mxu1 %v3273_v17 }
 0x611   :  { %1212 = vmatpush1.msra.mxu1 %v3277_v18 }
 0x612   :  { %1767 = vmatprep.subr.mxu1 %v3255_v10 }
 0x6ca   :  { %v3394_v53 = vpop.f32.mrf.mxu1 }
 0x6cc   :  { %v687_v54 = vpop.f32.mrf.mxu1 }
 0x6cd   :  { %v690_v55 = vadd.f32 %v3307_v29, %v687_v54 }
 0x6cf   :  { %v698_v56 = vrot.slane %v690_v55, %v3309_v30 }
 0x6d1   :  { %v699_v57 = vcombine.high %v698_v56, %v698_v56  ;;  %v706_v59 = vrot.slane %v698_v56, %v3309_v30 }
 0x6d3   :  { %v713_v60 = vrot.slane %v699_v57, %v3309_v30  ;;  %v717_v61 = vrot.slane %v706_v59, %v3313_v34 }
 0x6d5   :  { %v721_v62 = vrot.slane %v713_v60, %v3313_v34  ;;  %v724_v1 = vadd.f32 %v717_v61, %v3296_v23 }
 0x6d7   :  { %v725_v2 = vadd.f32 %v721_v62, %v3300_v27  ;;  %2811 = vtanh.f32 %v724_v1 }
 0x6d9   :  { %2813 = vtanh.f32 %v725_v2 }
 0x6e4   :  { %v2812_v3 = vpop.eup %2811 }
 0x6e5   :  { %v728_v4 = vmul.f32 %v2812_v3, %v3324_v42 }
 0x6e6   :  { %v2814_v5 = vpop.eup %2813 }
 0x6e7   :  { %v730_v6 = vsel %vm128_vm0, %v728_v4, 0.0  ;;  %v729_v7 = vmul.f32 %v2814_v5, %v3324_v42 }
 0x6e8   :  { %731 = vadd.xlane.f32.xlu1 %v730_v6 }
 0x6e9   :  { %v733_v8 = vsel %vm128_vm0, %v729_v7, 0.0  ;;  %v833_v7 = vld [vmem:[#allocation2 + $0x2] sm:$0x3] }
 0x6ea   :  { %734 = vadd.xlane.f32.xlu0 %v733_v8  ;;  %v828_v8 = vrot.slane %v3394_v53, 1 }
 0x771   :  { %v732_v9 = vpop.xlane.xlu1 %731 }
 0x772   :  { %v741_v20 = vrot.slane %v732_v9, %v3330_v51 }
 0x773   :  { %v735_v14 = vpop.xlane.xlu0 %734 }
 0x774   :  { %v745_v28 = vrot.slane %v735_v14, %v3330_v51 }
 0x776   :  { %v746_v21 = vsel %vm456_vm1, %v745_v28, %v741_v20  ;;  %v835_v20 = vrot.slane %v833_v7, 1 }
 0x777   :  { %v748_v22 = vsel %vm459_vm2, %v746_v21, -inf }
 0x778   :  { %749 = vmax.xlane.f32.xlu0 %v748_v22 }
 0x801   :  { %v750_v25 = vpop.xlane.xlu0 %749 }
 0x802   :  { %v755_v26 = vrot.slane %v750_v25, %v3313_v34  ;;  %v759_v31 = vrot.slane %v750_v25, %v3336_v58 }
 0x804   :  { %v762_v32 = vsub.f32 %v732_v9, %v755_v26  ;;  %v763_v33 = vsub.f32 %v735_v14, %v759_v31 }
 0x806   :  { %v764_v35 = vmul.f32 1.442695, %v762_v32  ;;  %v766_v36 = vmul.f32 1.442695, %v763_v33 }
 0x808   :  { %2815 = vpow2.f32 %v764_v35 }
 0x809   :  { %2817 = vpow2.f32 %v766_v36 }
 0x815   :  { %v2816_v37 = vpop.eup %2815 }
 0x816   :  { %v2818_v39 = vpop.eup %2817  ;;  %771 = vperm.xlu1 %2783, %v2816_v37  }
 0x817   :  { %774 = vperm.xlu0 %2784, %v2818_v39  }
 0x891   :  { %v772_v40 = vpop.permute.xlu1 %771 }
 0x892   :  { %v775_v43 = vpop.permute.xlu0 %774  ;;  %v779_v44 = vrot.slane %v772_v40, %v3330_v51 }
 0x893   :  { %v783_v45 = vrot.slane %v775_v43, %v3330_v51 }
 0x895   :  { %v784_v46 = vsel %vm456_vm1, %v783_v45, %v779_v44 }
 0x896   :  { %v786_v47 = vsel %vm459_vm2, %v784_v46, 0.0 }
 0x897   :  { %787 = vadd.xlane.f32.xlu1 %v786_v47 }
 0x920   :  { %v788_v48 = vpop.xlane.xlu1 %787 }
 0x921   :  { %2819 = vrcp.f32 %v788_v48 }
 0x92e   :  { %v2820_v49 = vpop.eup %2819 }
 0x92f   :  { %v798_v50 = vrot.slane %v2820_v49, %v3336_v58  ;;  %v794_v54 = vrot.slane %v2820_v49, %v3313_v34 }
 0x931   :  { %v802_v52 = vmul.f32 %v2818_v39, %v798_v50  ;;  %v801_v55 = vmul.f32 %v2816_v37, %v794_v54 }
 0x933   :  { %810 = vperm.xlu0 %2784, %v802_v52  }
 0x937   :  { %805 = vperm.xlu0 %2784, %v801_v55  }
 0x9ae   :  { %v811_v56 = vpop.permute.xlu0 %810 }
 0x9af   :  { %v814_v57 = vmul.f32 %v811_v56, %v3298_v24 }
 0x9b1   :  { %v821_v59 = vrot.slane %v814_v57, 4 }
 0x9b2   :  { %v806_v60 = vpop.permute.xlu0 %805 }
 0x9b3   :  { %v822_v61 = vadd.f32 %v821_v59, %v814_v57  ;;  %v813_v62 = vmul.f32 %v806_v60, %v3294_v19 }
 0x9b5   :  { %v823_v1 = vrot.slane %v822_v61, 2  ;;  %v815_v2 = vrot.slane %v813_v62, 4 }
 0x9b7   :  { %v824_v3 = vadd.f32 %v823_v1, %v822_v61  ;;  %v816_v4 = vadd.f32 %v815_v2, %v813_v62 }
 0x9b9   :  { %v825_v5 = vrot.slane %v824_v3, 1  ;;  %v817_v6 = vrot.slane %v816_v4, 2 }
 0x9bb   :  { %v826_v9 = vadd.f32 %v825_v5, %v824_v3  ;;  %v818_v14 = vadd.f32 %v817_v6, %v816_v4 }
 0x9bd   :  { %v832_v28 = vadd.f32 %v828_v8, %v826_v9  ;;  %v819_v21 = vrot.slane %v818_v14, 1 }
 0x9bf   :  { %v839_v22 = vadd.f32 %v835_v20, %v832_v28  ;;  %v820_v25 = vadd.f32 %v819_v21, %v818_v14 }
 0x9c1   :  { %v841_v26 = vadd.f32 %v3364_v63, %v839_v22  ;;  %v831_v31 = vadd.f32 %v820_v25, %v3394_v53 }
 0x9c3   :  { %2821 = vtanh.f32 %v841_v26  ;;  %v838_v32 = vadd.f32 %v833_v7, %v831_v31  ;;  %v2711_v37 = vmul.f32 -1.442695, %v841_v26 }
 0x9c5   :  { %v840_v33 = vadd.f32 %v3364_v63, %v838_v32 }
 0x9c7   :  { %2823 = vtanh.f32 %v840_v33  ;;  %v2710_v39 = vmul.f32 -1.442695, %v840_v33 }
 0x9c8   :  { %2825 = vpow2.f32 %v2711_v37 }
 0x9c9   :  { %2827 = vpow2.f32 %v2710_v39 }
 0x9d0   :  { %v2822_v35 = vpop.eup %2821 }
 0x9d1   :  { %862 = vrot.lane.b32.xlu0 %v2822_v35, %s3166_s1 }
 0x9d4   :  { %v2824_v36 = vpop.eup %2823 }
 0x9d5   :  { %860 = vrot.lane.b32.xlu0 %v2824_v36, %s3166_s1  ;;  %v2826_v40 = vpop.eup %2825 }
 0x9d6   :  { %v849_v43 = vadd.f32 1.0, %v2826_v40  ;;  %v2828_v44 = vpop.eup %2827 }
 0x9d7   :  { %v848_v53 = vadd.f32 1.0, %v2828_v44 }
 0x9d8   :  { %2829 = vrcp.f32 %v849_v43 }
 0x9d9   :  { %2831 = vrcp.f32 %v848_v53 }
 0x9e5   :  { %v2830_v45 = vpop.eup %2829 }
 0x9e6   :  { %v2832_v48 = vpop.eup %2831  ;;  %v857_v52 = vmul.f32 %v2830_v45, %v3373_v38 }
 0x9e7   :  { %v856_v56 = vmul.f32 %v2832_v48, %v3376_v41 }
 0xa43   :  { %v863_v46 = vpop.permute.xlu0 %862 }
 0xa44   :  { %v867_v47 = vmul.f32 %v2830_v45, %v863_v46 }
 0xa46   :  { %872 = vrot.lane.b32.xlu0 %v867_v47, %s3167_s29 }
 0xa47   :  { %v861_v49 = vpop.permute.xlu0 %860 }
 0xa48   :  { %v866_v50 = vmul.f32 %v2832_v48, %v861_v49 }
 0xa4a   :  { %870 = vrot.lane.b32.xlu0 %v866_v50, %s3167_s29 }
 0xab8   :  { %v873_v54 = vpop.permute.xlu0 %872 }
 0xab9   :  { %v3431_v55 = vadd.f32 %v873_v54, %v857_v52 }
 0xabb   :  { %2833 = vtanh.f32 %v3431_v55 }
 0xabc   :  { %v871_v57 = vpop.permute.xlu0 %870 }
 0xabd   :  { %v3435_v59 = vadd.f32 %v871_v57, %v856_v56 }
 0xabf   :  { %2835 = vtanh.f32 %v3435_v59 }
 0xac8   :  { %v2834_v60 = vpop.eup %2833 }
 0xac9   :  { %884 = vrot.lane.b32.xlu0 %v2834_v60, %s3166_s1 }
 0xacc   :  { %v2836_v61 = vpop.eup %2835 }
 0xacd   :  { %882 = vrot.lane.b32.xlu0 %v2836_v61, %s3166_s1 }
 0xb3b   :  { %v885_v62 = vpop.permute.xlu0 %884 }
 0xb3c   :  { %v889_v38 = vmul.f32 %v2830_v45, %v885_v62 }
 0xb3e   :  { %v892_v2 = vrot.slane %v889_v38, 7 }
 0xb3f   :  { %v883_v1 = vpop.permute.xlu0 %882 }
 0xb40   :  { %v888_v3 = vmul.f32 %v2832_v48, %v883_v1 }
 0xb42   :  { %v893_v4 = vsel %vm456_vm1, %v892_v2, %v888_v3 }
 0xb43   :  { %894 = vrot.lane.b32.xlu1 %v893_v4, %s3167_s29 }
 0xbb5   :  { %v895_v41 = vpop.permute.xlu1 %894 }
 0xbb6   :  { %897 = vst.msk [vmem:[#allocation3 + $0x2] sm:$0x3] %vm615_vm3, %v895_v41  ;;  %2712 = vmatmul.mubr.msk.f32.vlgmr.msra.gmra.mxu0 %vm128_vm0, %v895_v41 }
 0xbb7   :  { %1487 = vmatpush1.msra.mxu0 %v3257_v11  ;;  %1526 = vmatprep.mubr.f32.mxu0 %v3163_v0 }
 0xbb8   :  { %1488 = vmatprep.subr.mxu0 %v3259_v12 }
 0xbb9   :  { %1489 = vmatpush1.msra.mxu0 %v3263_v13 }
 0xbba   :  { %1490 = vmatprep.subr.mxu0 %v3267_v15 }
 0xbbb   :  { %1491 = vmatpush1.msra.mxu0 %v3270_v16 }
 0xbbc   :  { %1492 = vmatprep.subr.mxu0 %v3273_v17 }
 0xbbd   :  { %1493 = vmatpush1.msra.mxu0 %v3277_v18 }
 0xbbe   :  { %2048 = vmatprep.subr.mxu0 %v3255_v10 }
 0xc76   :  { %v3453_v5 = vpop.f32.mrf.mxu0 }
 0xc78   :  { %v968_v6 = vpop.f32.mrf.mxu0 }
 0xc79   :  { %v971_v7 = vadd.f32 %v3307_v29, %v968_v6 }
 0xc7b   :  { %v979_v8 = vrot.slane %v971_v7, %v3309_v30 }
 0xc7d   :  { %v980_v9 = vcombine.high %v979_v8, %v979_v8  ;;  %v987_v14 = vrot.slane %v979_v8, %v3309_v30 }
 0xc7f   :  { %v994_v20 = vrot.slane %v980_v9, %v3309_v30  ;;  %v998_v28 = vrot.slane %v987_v14, %v3313_v34 }
 0xc81   :  { %v1002_v21 = vrot.slane %v994_v20, %v3313_v34  ;;  %v1005_v22 = vadd.f32 %v998_v28, %v3296_v23 }
 0xc83   :  { %v1006_v25 = vadd.f32 %v1002_v21, %v3300_v27  ;;  %2837 = vtanh.f32 %v1005_v22 }
 0xc85   :  { %2839 = vtanh.f32 %v1006_v25 }
 0xc90   :  { %v2838_v26 = vpop.eup %2837 }
 0xc91   :  { %v1009_v31 = vmul.f32 %v2838_v26, %v3324_v42 }
 0xc92   :  { %v2840_v32 = vpop.eup %2839 }
 0xc93   :  { %v1011_v33 = vsel %vm128_vm0, %v1009_v31, 0.0  ;;  %v1010_v35 = vmul.f32 %v2840_v32, %v3324_v42 }
 0xc94   :  { %1012 = vadd.xlane.f32.xlu0 %v1011_v33 }
 0xc95   :  { %v1014_v36 = vsel %vm128_vm0, %v1010_v35, 0.0  ;;  %v1114_v35 = vld [vmem:[#allocation2 + $0x4] sm:$0x3] }
 0xc96   :  { %1015 = vadd.xlane.f32.xlu1 %v1014_v36  ;;  %v1109_v36 = vrot.slane %v3453_v5, 1 }
 0xd1d   :  { %v1013_v37 = vpop.xlane.xlu0 %1012 }
 0xd1e   :  { %v1022_v40 = vrot.slane %v1013_v37, %v3330_v51 }
 0xd1f   :  { %v1016_v39 = vpop.xlane.xlu1 %1015 }
 0xd20   :  { %v1026_v43 = vrot.slane %v1016_v39, %v3330_v51 }
 0xd22   :  { %v1027_v44 = vsel %vm456_vm1, %v1026_v43, %v1022_v40  ;;  %v1116_v40 = vrot.slane %v1114_v35, 1 }
 0xd23   :  { %v1029_v53 = vsel %vm459_vm2, %v1027_v44, -inf }
 0xd24   :  { %1030 = vmax.xlane.f32.xlu0 %v1029_v53 }
 0xdad   :  { %v1031_v45 = vpop.xlane.xlu0 %1030 }
 0xdae   :  { %v1036_v46 = vrot.slane %v1031_v45, %v3313_v34  ;;  %v1040_v47 = vrot.slane %v1031_v45, %v3336_v58 }
 0xdb0   :  { %v1043_v48 = vsub.f32 %v1013_v37, %v1036_v46  ;;  %v1044_v49 = vsub.f32 %v1016_v39, %v1040_v47 }
 0xdb2   :  { %v1045_v50 = vmul.f32 1.442695, %v1043_v48  ;;  %v1047_v52 = vmul.f32 1.442695, %v1044_v49 }
 0xdb4   :  { %2841 = vpow2.f32 %v1045_v50 }
 0xdb5   :  { %2843 = vpow2.f32 %v1047_v52 }
 0xdc1   :  { %v2842_v54 = vpop.eup %2841 }
 0xdc2   :  { %v2844_v56 = vpop.eup %2843  ;;  %1052 = vperm.xlu0 %2784, %v2842_v54  }
 0xdc3   :  { %1055 = vperm.xlu1 %2783, %v2844_v56  }
 0xe3d   :  { %v1053_v57 = vpop.permute.xlu0 %1052 }
 0xe3e   :  { %v1056_v60 = vpop.permute.xlu1 %1055  ;;  %v1060_v61 = vrot.slane %v1053_v57, %v3330_v51 }
 0xe3f   :  { %v1064_v62 = vrot.slane %v1056_v60, %v3330_v51 }
 0xe41   :  { %v1065_v38 = vsel %vm456_vm1, %v1064_v62, %v1060_v61 }
 0xe42   :  { %v1067_v1 = vsel %vm459_vm2, %v1065_v38, 0.0 }
 0xe43   :  { %1068 = vadd.xlane.f32.xlu0 %v1067_v1 }
 0xecc   :  { %v1069_v2 = vpop.xlane.xlu0 %1068 }
 0xecd   :  { %2845 = vrcp.f32 %v1069_v2 }
 0xeda   :  { %v2846_v3 = vpop.eup %2845 }
 0xedb   :  { %v1079_v4 = vrot.slane %v2846_v3, %v3336_v58  ;;  %v1075_v6 = vrot.slane %v2846_v3, %v3313_v34 }
 0xedd   :  { %v1083_v41 = vmul.f32 %v2844_v56, %v1079_v4  ;;  %v1082_v7 = vmul.f32 %v2842_v54, %v1075_v6 }
 0xedf   :  { %1091 = vperm.xlu1 %2783, %v1083_v41  }
 0xee3   :  { %1086 = vperm.xlu1 %2783, %v1082_v7  }
 0xf5a   :  { %v1092_v8 = vpop.permute.xlu1 %1091 }
 0xf5b   :  { %v1095_v9 = vmul.f32 %v1092_v8, %v3298_v24 }
 0xf5d   :  { %v1102_v14 = vrot.slane %v1095_v9, 4 }
 0xf5e   :  { %v1087_v20 = vpop.permute.xlu1 %1086 }
 0xf5f   :  { %v1103_v28 = vadd.f32 %v1102_v14, %v1095_v9  ;;  %v1094_v21 = vmul.f32 %v1087_v20, %v3294_v19 }
 0xf61   :  { %v1104_v22 = vrot.slane %v1103_v28, 2  ;;  %v1096_v25 = vrot.slane %v1094_v21, 4 }
 0xf63   :  { %v1105_v26 = vadd.f32 %v1104_v22, %v1103_v28  ;;  %v1097_v31 = vadd.f32 %v1096_v25, %v1094_v21 }
 0xf65   :  { %v1106_v32 = vrot.slane %v1105_v26, 1  ;;  %v1098_v33 = vrot.slane %v1097_v31, 2 }
 0xf67   :  { %v1107_v37 = vadd.f32 %v1106_v32, %v1105_v26  ;;  %v1099_v39 = vadd.f32 %v1098_v33, %v1097_v31 }
 0xf69   :  { %v1113_v43 = vadd.f32 %v1109_v36, %v1107_v37  ;;  %v1100_v44 = vrot.slane %v1099_v39, 1 }
 0xf6b   :  { %v1120_v53 = vadd.f32 %v1116_v40, %v1113_v43  ;;  %v1101_v45 = vadd.f32 %v1100_v44, %v1099_v39 }
 0xf6d   :  { %v1122_v46 = vadd.f32 %v3364_v63, %v1120_v53  ;;  %v1112_v47 = vadd.f32 %v1101_v45, %v3453_v5 }
 0xf6f   :  { %2847 = vtanh.f32 %v1122_v46  ;;  %v1119_v48 = vadd.f32 %v1114_v35, %v1112_v47  ;;  %v2714_v54 = vmul.f32 -1.442695, %v1122_v46 }
 0xf71   :  { %v1121_v49 = vadd.f32 %v3364_v63, %v1119_v48 }
 0xf73   :  { %2849 = vtanh.f32 %v1121_v49  ;;  %v2713_v56 = vmul.f32 -1.442695, %v1121_v49 }
 0xf74   :  { %2851 = vpow2.f32 %v2714_v54 }
 0xf75   :  { %2853 = vpow2.f32 %v2713_v56 }
 0xf7c   :  { %v2848_v50 = vpop.eup %2847 }
 0xf7d   :  { %1143 = vrot.lane.b32.xlu1 %v2848_v50, %s3166_s1 }
 0xf80   :  { %v2850_v52 = vpop.eup %2849 }
 0xf81   :  { %1141 = vrot.lane.b32.xlu1 %v2850_v52, %s3166_s1  ;;  %v2852_v57 = vpop.eup %2851 }
 0xf82   :  { %v1130_v60 = vadd.f32 1.0, %v2852_v57  ;;  %v2854_v61 = vpop.eup %2853 }
 0xf83   :  { %v1129_v5 = vadd.f32 1.0, %v2854_v61 }
 0xf84   :  { %2855 = vrcp.f32 %v1130_v60 }
 0xf85   :  { %2857 = vrcp.f32 %v1129_v5 }
 0xf91   :  { %v2856_v62 = vpop.eup %2855 }
 0xf92   :  { %v2858_v2 = vpop.eup %2857  ;;  %v1138_v41 = vmul.f32 %v2856_v62, %v3431_v55 }
 0xf93   :  { %v1137_v8 = vmul.f32 %v2858_v2, %v3435_v59 }
 0xfef   :  { %v1144_v38 = vpop.permute.xlu1 %1143 }
 0xff0   :  { %v1148_v1 = vmul.f32 %v2856_v62, %v1144_v38 }
 0xff2   :  { %1153 = vrot.lane.b32.xlu1 %v1148_v1, %s3167_s29 }
 0xff3   :  { %v1142_v3 = vpop.permute.xlu1 %1141 }
 0xff4   :  { %v1147_v4 = vmul.f32 %v2858_v2, %v1142_v3 }
 0xff6   :  { %1151 = vrot.lane.b32.xlu0 %v1147_v4, %s3167_s29 }
0x1064   :  { %v1154_v6 = vpop.permute.xlu1 %1153 }
0x1065   :  { %v3490_v7 = vadd.f32 %v1154_v6, %v1138_v41 }
0x1067   :  { %2859 = vtanh.f32 %v3490_v7 }
0x1068   :  { %v1152_v9 = vpop.permute.xlu0 %1151 }
0x1069   :  { %v3494_v14 = vadd.f32 %v1152_v9, %v1137_v8 }
0x106b   :  { %2861 = vtanh.f32 %v3494_v14 }
0x1074   :  { %v2860_v20 = vpop.eup %2859 }
0x1075   :  { %1165 = vrot.lane.b32.xlu1 %v2860_v20, %s3166_s1 }
0x1078   :  { %v2862_v28 = vpop.eup %2861 }
0x1079   :  { %1163 = vrot.lane.b32.xlu1 %v2862_v28, %s3166_s1 }
0x10e7   :  { %v1166_v21 = vpop.permute.xlu1 %1165 }
0x10e8   :  { %v1170_v55 = vmul.f32 %v2856_v62, %v1166_v21 }
0x10ea   :  { %v1173_v25 = vrot.slane %v1170_v55, 7 }
0x10eb   :  { %v1164_v22 = vpop.permute.xlu1 %1163 }
0x10ec   :  { %v1169_v26 = vmul.f32 %v2858_v2, %v1164_v22 }
0x10ee   :  { %v1174_v31 = vsel %vm456_vm1, %v1173_v25, %v1169_v26 }
0x10ef   :  { %1175 = vrot.lane.b32.xlu1 %v1174_v31, %s3167_s29 }
0x1161   :  { %v1176_v59 = vpop.permute.xlu1 %1175 }
0x1162   :  { %1178 = vst.msk [vmem:[#allocation3 + $0x4] sm:$0x3] %vm615_vm3, %v1176_v59  ;;  %2715 = vmatmul.mubr.msk.f32.vlgmr.msra.gmra.mxu1 %vm128_vm0, %v1176_v59 }
0x1163   :  { %1768 = vmatpush1.msra.mxu1 %v3257_v11  ;;  %1807 = vmatprep.mubr.f32.mxu1 %v3163_v0 }
0x1164   :  { %1769 = vmatprep.subr.mxu1 %v3259_v12 }
0x1165   :  { %1770 = vmatpush1.msra.mxu1 %v3263_v13 }
0x1166   :  { %1771 = vmatprep.subr.mxu1 %v3267_v15 }
0x1167   :  { %1772 = vmatpush1.msra.mxu1 %v3270_v16 }
0x1168   :  { %1773 = vmatprep.subr.mxu1 %v3273_v17 }
0x1169   :  { %1774 = vmatpush1.msra.mxu1 %v3277_v18 }
0x116a   :  { %2329 = vmatprep.subr.mxu1 %v3255_v10 }
0x1222   :  { %v3512_v32 = vpop.f32.mrf.mxu1 }
0x1224   :  { %v1249_v33 = vpop.f32.mrf.mxu1 }
0x1225   :  { %v1252_v11 = vadd.f32 %v3307_v29, %v1249_v33 }
0x1227   :  { %v1260_v35 = vrot.slane %v1252_v11, %v3309_v30 }
0x1229   :  { %v1261_v12 = vcombine.high %v1260_v35, %v1260_v35  ;;  %v1268_v13 = vrot.slane %v1260_v35, %v3309_v30 }
0x122b   :  { %v1275_v15 = vrot.slane %v1261_v12, %v3309_v30  ;;  %v1279_v16 = vrot.slane %v1268_v13, %v3313_v34  ;;  %v1395_v13 = vld [vmem:[#allocation2 + $0x6] sm:$0x3] }
0x122d   :  { %v1283_v17 = vrot.slane %v1275_v15, %v3313_v34  ;;  %v1286_v18 = vadd.f32 %v1279_v16, %v3296_v23  ;;  %v1390_v15 = vrot.slane %v3512_v32, 1 }
0x122f   :  { %v1287_v10 = vadd.f32 %v1283_v17, %v3300_v27  ;;  %2863 = vtanh.f32 %v1286_v18  ;;  %v1397_v18 = vrot.slane %v1395_v13, 1 }
0x1231   :  { %2865 = vtanh.f32 %v1287_v10 }
0x123c   :  { %v2864_v36 = vpop.eup %2863 }
0x123d   :  { %v1290_v29 = vmul.f32 %v2864_v36, %v3324_v42 }
0x123e   :  { %v2866_v37 = vpop.eup %2865 }
0x123f   :  { %v1292_v39 = vsel %vm128_vm0, %v1290_v29, 0.0  ;;  %v1291_v40 = vmul.f32 %v2866_v37, %v3324_v42 }
0x1240   :  { %1293 = vadd.xlane.f32.xlu1 %v1292_v39 }
0x1241   :  { %v1295_v43 = vsel %vm128_vm0, %v1291_v40, 0.0 }
0x1242   :  { %1296 = vadd.xlane.f32.xlu0 %v1295_v43 }
0x12c9   :  { %v1294_v44 = vpop.xlane.xlu1 %1293 }
0x12ca   :  { %v1303_v45 = vrot.slane %v1294_v44, %v3330_v51 }
0x12cb   :  { %v1297_v53 = vpop.xlane.xlu0 %1296 }
0x12cc   :  { %v1307_v46 = vrot.slane %v1297_v53, %v3330_v51 }
0x12ce   :  { %v1308_v47 = vsel %vm456_vm1, %v1307_v46, %v1303_v45 }
0x12cf   :  { %v1310_v48 = vsel %vm459_vm2, %v1308_v47, -inf }
0x12d0   :  { %1311 = vmax.xlane.f32.xlu1 %v1310_v48 }
0x1359   :  { %v1312_v49 = vpop.xlane.xlu1 %1311 }
0x135a   :  { %v1317_v50 = vrot.slane %v1312_v49, %v3313_v34  ;;  %v1321_v42 = vrot.slane %v1312_v49, %v3336_v58 }
0x135c   :  { %v1324_v52 = vsub.f32 %v1294_v44, %v1317_v50  ;;  %v1325_v54 = vsub.f32 %v1297_v53, %v1321_v42 }
0x135e   :  { %v1326_v56 = vmul.f32 1.442695, %v1324_v52  ;;  %v1328_v57 = vmul.f32 1.442695, %v1325_v54 }
0x1360   :  { %2867 = vpow2.f32 %v1326_v56 }
0x1361   :  { %2869 = vpow2.f32 %v1328_v57 }
0x136d   :  { %v2868_v60 = vpop.eup %2867 }
0x136e   :  { %v2870_v61 = vpop.eup %2869  ;;  %1333 = vperm.xlu1 %2783, %v2868_v60  }
0x136f   :  { %1336 = vperm.xlu0 %2784, %v2870_v61  }
0x13e9   :  { %v1334_v5 = vpop.permute.xlu1 %1333 }
0x13ea   :  { %v1337_v62 = vpop.permute.xlu0 %1336  ;;  %v1341_v38 = vrot.slane %v1334_v5, %v3330_v51 }
0x13eb   :  { %v1345_v1 = vrot.slane %v1337_v62, %v3330_v51 }
0x13ed   :  { %v1346_v2 = vsel %vm456_vm1, %v1345_v1, %v1341_v38 }
0x13ee   :  { %v1348_v3 = vsel %vm459_vm2, %v1346_v2, 0.0 }
0x13ef   :  { %1349 = vadd.xlane.f32.xlu1 %v1348_v3 }
0x1478   :  { %v1350_v4 = vpop.xlane.xlu1 %1349 }
0x1479   :  { %2871 = vrcp.f32 %v1350_v4 }
0x1486   :  { %v2872_v41 = vpop.eup %2871 }
0x1487   :  { %v1360_v6 = vrot.slane %v2872_v41, %v3336_v58  ;;  %v1356_v9 = vrot.slane %v2872_v41, %v3313_v34 }
0x1489   :  { %v1364_v8 = vmul.f32 %v2870_v61, %v1360_v6  ;;  %v1363_v20 = vmul.f32 %v2868_v60, %v1356_v9 }
0x148b   :  { %1372 = vperm.xlu0 %2784, %v1364_v8  }
0x148f   :  { %1367 = vperm.xlu0 %2784, %v1363_v20   ;;  %v3562_v20 = vld [vmem:[#allocation10 + $0x30] sm:$0xff] }
0x1506   :  { %v1373_v28 = vpop.permute.xlu0 %1372 }
0x1507   :  { %v1376_v21 = vmul.f32 %v1373_v28, %v3298_v24  ;;  %v3566_v28 = vld [vmem:[#allocation10 + $0x28] sm:$0xff] }
0x1509   :  { %v1383_v55 = vrot.slane %v1376_v21, 4 }
0x150a   :  { %v1368_v22 = vpop.permute.xlu0 %1367 }
0x150b   :  { %v1384_v25 = vadd.f32 %v1383_v55, %v1376_v21  ;;  %v1375_v26 = vmul.f32 %v1368_v22, %v3294_v19  ;;  %v3569_v21 = vld [vmem:[#allocation10 + $0x20] sm:$0xff]  ;;  %v3572_v55 = vld [vmem:[#allocation10 + $0x18] sm:$0xff]  ;;  %v3575_v22 = vld [vmem:[#allocation10 + $0x10] sm:$0xff] }
0x150d   :  { %v1385_v31 = vrot.slane %v1384_v25, 2  ;;  %v1377_v59 = vrot.slane %v1375_v26, 4 }
0x150f   :  { %v1386_v33 = vadd.f32 %v1385_v31, %v1384_v25  ;;  %v1378_v11 = vadd.f32 %v1377_v59, %v1375_v26  ;;  %v3578_v25 = vld [vmem:[#allocation10 + $0x8] sm:$0xff]  ;;  %v3581_v26 = vld [vmem:[#allocation10] sm:$0xff] }
0x1511   :  { %v1387_v35 = vrot.slane %v1386_v33, 1  ;;  %v1379_v12 = vrot.slane %v1378_v11, 2 }
0x1513   :  { %v1388_v16 = vadd.f32 %v1387_v35, %v1386_v33  ;;  %v1380_v17 = vadd.f32 %v1379_v12, %v1378_v11  ;;  %v3589_v33 = vld [vmem:[%s3815_s4] ss:$0 sm:$0xff] }
0x1515   :  { %v1394_v10 = vadd.f32 %v1390_v15, %v1388_v16  ;;  %v1381_v36 = vrot.slane %v1380_v17, 1 }
0x1517   :  { %v1401_v29 = vadd.f32 %v1397_v18, %v1394_v10  ;;  %v1382_v37 = vadd.f32 %v1381_v36, %v1380_v17 }
0x1519   :  { %v1403_v39 = vadd.f32 %v3364_v63, %v1401_v29  ;;  %v1393_v40 = vadd.f32 %v1382_v37, %v3512_v32  ;;  %v3602_v29 = vld [vmem:[%s3816_s5] ss:$0 sm:$0xff] }
0x151b   :  { %2873 = vtanh.f32 %v1403_v39  ;;  %v1400_v43 = vadd.f32 %v1395_v13, %v1393_v40  ;;  %v2717_v46 = vmul.f32 -1.442695, %v1403_v39 }
0x151d   :  { %v1402_v44 = vadd.f32 %v3364_v63, %v1400_v43 }
0x151f   :  { %2875 = vtanh.f32 %v1402_v44  ;;  %v2716_v47 = vmul.f32 -1.442695, %v1402_v44 }
0x1520   :  { %2877 = vpow2.f32 %v2717_v46 }
0x1521   :  { %2879 = vpow2.f32 %v2716_v47 }
0x1528   :  { %v2874_v53 = vpop.eup %2873 }
0x1529   :  { %1424 = vrot.lane.b32.xlu0 %v2874_v53, %s3166_s1 }
0x152c   :  { %v2876_v45 = vpop.eup %2875 }
0x152d   :  { %1422 = vrot.lane.b32.xlu0 %v2876_v45, %s3166_s1  ;;  %v2878_v48 = vpop.eup %2877 }
0x152e   :  { %v1411_v49 = vadd.f32 1.0, %v2878_v48  ;;  %v2880_v50 = vpop.eup %2879 }
0x152f   :  { %v1410_v32 = vadd.f32 1.0, %v2880_v50 }
0x1530   :  { %2881 = vrcp.f32 %v1411_v49 }
0x1531   :  { %2883 = vrcp.f32 %v1410_v32 }
0x153d   :  { %v2882_v42 = vpop.eup %2881 }
0x153e   :  { %v2884_v54 = vpop.eup %2883  ;;  %v1419_v60 = vmul.f32 %v2882_v42, %v3490_v7 }
0x153f   :  { %v1418_v62 = vmul.f32 %v2884_v54, %v3494_v14 }
0x159b   :  { %v1425_v52 = vpop.permute.xlu0 %1424 }
0x159c   :  { %v1429_v63 = vmul.f32 %v2882_v42, %v1425_v52 }
0x159e   :  { %1434 = vrot.lane.b32.xlu0 %v1429_v63, %s3167_s29 }
0x159f   :  { %v1423_v56 = vpop.permute.xlu0 %1422 }
0x15a0   :  { %v1428_v57 = vmul.f32 %v2884_v54, %v1423_v56 }
0x15a2   :  { %1432 = vrot.lane.b32.xlu0 %v1428_v57, %s3167_s29 }
0x1610   :  { %v1435_v61 = vpop.permute.xlu0 %1434 }
0x1611   :  { %v3549_v5 = vadd.f32 %v1435_v61, %v1419_v60 }
0x1613   :  { %2885 = vtanh.f32 %v3549_v5 }
0x1614   :  { %v1433_v38 = vpop.permute.xlu0 %1432 }
0x1615   :  { %v3553_v1 = vadd.f32 %v1433_v38, %v1418_v62 }
0x1617   :  { %2887 = vtanh.f32 %v3553_v1 }
0x1620   :  { %v2886_v2 = vpop.eup %2885 }
0x1621   :  { %1446 = vrot.lane.b32.xlu0 %v2886_v2, %s3166_s1 }
0x1624   :  { %v2888_v3 = vpop.eup %2887 }
0x1625   :  { %1444 = vrot.lane.b32.xlu0 %v2888_v3, %s3166_s1 }
0x1693   :  { %v1447_v4 = vpop.permute.xlu0 %1446 }
0x1694   :  { %v1451_v7 = vmul.f32 %v2882_v42, %v1447_v4 }
0x1696   :  { %v1454_v6 = vrot.slane %v1451_v7, 7 }
0x1697   :  { %v1445_v41 = vpop.permute.xlu0 %1444 }
0x1698   :  { %v1450_v8 = vmul.f32 %v2884_v54, %v1445_v41 }
0x169a   :  { %v1455_v9 = vsel %vm456_vm1, %v1454_v6, %v1450_v8 }
0x169b   :  { %1456 = vrot.lane.b32.xlu1 %v1455_v9, %s3167_s29 }
0x170d   :  { %v1457_v14 = vpop.permute.xlu1 %1456 }
0x170e   :  { %1459 = vst.msk [vmem:[#allocation3 + $0x6] sm:$0x3] %vm615_vm3, %v1457_v14  ;;  %2718 = vmatmul.mubr.msk.f32.vlgmr.msra.gmra.mxu0 %vm128_vm0, %v1457_v14 }
0x170f   :  { %2049 = vmatpush1.msra.mxu0 %v3562_v20  ;;  %2088 = vmatprep.mubr.f32.mxu0 %v3163_v0 }
0x1710   :  { %2050 = vmatprep.subr.mxu0 %v3566_v28 }
0x1711   :  { %2051 = vmatpush1.msra.mxu0 %v3569_v21 }
0x1712   :  { %2052 = vmatprep.subr.mxu0 %v3572_v55 }
0x1713   :  { %2053 = vmatpush1.msra.mxu0 %v3575_v22 }
0x1714   :  { %2054 = vmatprep.subr.mxu0 %v3578_v25 }
0x1715   :  { %2055 = vmatpush1.msra.mxu0 %v3581_v26 }
0x17ce   :  { %v3584_v31 = vpop.f32.mrf.mxu0 }
0x17d0   :  { %v1530_v59 = vpop.f32.mrf.mxu0 }
0x17d1   :  { %v1533_v11 = vadd.f32 %v3589_v33, %v1530_v59 }
0x17d3   :  { %v1541_v35 = vrot.slane %v1533_v11, %v3309_v30 }
0x17d5   :  { %v1542_v12 = vcombine.high %v1541_v35, %v1541_v35  ;;  %v1549_v13 = vrot.slane %v1541_v35, %v3309_v30 }
0x17d7   :  { %v1556_v15 = vrot.slane %v1542_v12, %v3309_v30  ;;  %v1560_v16 = vrot.slane %v1549_v13, %v3313_v34 }
0x17d9   :  { %v1564_v17 = vrot.slane %v1556_v15, %v3313_v34  ;;  %v1567_v18 = vadd.f32 %v1560_v16, %v3296_v23 }
0x17db   :  { %v1568_v10 = vadd.f32 %v1564_v17, %v3300_v27  ;;  %2889 = vtanh.f32 %v1567_v18 }
0x17dd   :  { %2891 = vtanh.f32 %v1568_v10 }
0x17e8   :  { %v2890_v36 = vpop.eup %2889 }
0x17e9   :  { %v1571_v37 = vmul.f32 %v3602_v29, %v2890_v36 }
0x17ea   :  { %v2892_v39 = vpop.eup %2891 }
0x17eb   :  { %v1573_v40 = vsel %vm128_vm0, %v1571_v37, 0.0  ;;  %v1572_v43 = vmul.f32 %v3602_v29, %v2892_v39  ;;  %v1676_v39 = vld [vmem:[#allocation2 + $0x8] sm:$0x3] }
0x17ec   :  { %1574 = vadd.xlane.f32.xlu0 %v1573_v40  ;;  %v1671_v40 = vrot.slane %v3584_v31, 1 }
0x17ed   :  { %v1576_v44 = vsel %vm128_vm0, %v1572_v43, 0.0 }
0x17ee   :  { %1577 = vadd.xlane.f32.xlu1 %v1576_v44 }
0x1875   :  { %v1575_v53 = vpop.xlane.xlu0 %1574 }
0x1876   :  { %v1584_v46 = vrot.slane %v1575_v53, %v3330_v51 }
0x1877   :  { %v1578_v45 = vpop.xlane.xlu1 %1577 }
0x1878   :  { %v1588_v47 = vrot.slane %v1578_v45, %v3330_v51 }
0x187a   :  { %v1589_v48 = vsel %vm456_vm1, %v1588_v47, %v1584_v46 }
0x187b   :  { %v1591_v49 = vsel %vm459_vm2, %v1589_v48, -inf }
0x187c   :  { %1592 = vmax.xlane.f32.xlu0 %v1591_v49  ;;  %v3626_v49 = vld [vmem:[%s3818_s7] ss:$0 sm:$0xff] }
0x1905   :  { %v1593_v50 = vpop.xlane.xlu0 %1592 }
0x1906   :  { %v1598_v32 = vrot.slane %v1593_v50, %v3313_v34  ;;  %v1602_v42 = vrot.slane %v1593_v50, %v3336_v58 }
0x1908   :  { %v1605_v52 = vsub.f32 %v1575_v53, %v1598_v32  ;;  %v1606_v63 = vsub.f32 %v1578_v45, %v1602_v42  ;;  %v1678_v53 = vrot.slane %v1676_v39, 1 }
0x190a   :  { %v1607_v54 = vmul.f32 1.442695, %v1605_v52  ;;  %v1609_v56 = vmul.f32 1.442695, %v1606_v63 }
0x190c   :  { %2893 = vpow2.f32 %v1607_v54 }
0x190d   :  { %2895 = vpow2.f32 %v1609_v56 }
0x1919   :  { %v2894_v57 = vpop.eup %2893 }
0x191a   :  { %v2896_v60 = vpop.eup %2895  ;;  %1614 = vperm.xlu0 %2784, %v2894_v57  }
0x191b   :  { %1617 = vperm.xlu1 %2783, %v2896_v60  }
0x1995   :  { %v1615_v61 = vpop.permute.xlu0 %1614 }
0x1996   :  { %v1618_v62 = vpop.permute.xlu1 %1617  ;;  %v1622_v38 = vrot.slane %v1615_v61, %v3330_v51 }
0x1997   :  { %v1626_v2 = vrot.slane %v1618_v62, %v3330_v51 }
0x1999   :  { %v1627_v3 = vsel %vm456_vm1, %v1626_v2, %v1622_v38 }
0x199a   :  { %v1629_v4 = vsel %vm459_vm2, %v1627_v3, 0.0 }
0x199b   :  { %1630 = vadd.xlane.f32.xlu0 %v1629_v4 }
0x1a24   :  { %v1631_v7 = vpop.xlane.xlu0 %1630 }
0x1a25   :  { %2897 = vrcp.f32 %v1631_v7 }
0x1a32   :  { %v2898_v41 = vpop.eup %2897 }
0x1a33   :  { %v1641_v6 = vrot.slane %v2898_v41, %v3336_v58  ;;  %v1637_v9 = vrot.slane %v2898_v41, %v3313_v34 }
0x1a35   :  { %v1645_v8 = vmul.f32 %v2896_v60, %v1641_v6  ;;  %v1644_v14 = vmul.f32 %v2894_v57, %v1637_v9 }
0x1a37   :  { %1653 = vperm.xlu1 %2783, %v1645_v8  }
0x1a3b   :  { %1648 = vperm.xlu1 %2783, %v1644_v14  }
0x1ab2   :  { %v1654_v59 = vpop.permute.xlu1 %1653 }
0x1ab3   :  { %v1657_v11 = vmul.f32 %v1654_v59, %v3298_v24 }
0x1ab5   :  { %v1664_v35 = vrot.slane %v1657_v11, 4 }
0x1ab6   :  { %v1649_v12 = vpop.permute.xlu1 %1648 }
0x1ab7   :  { %v1665_v13 = vadd.f32 %v1664_v35, %v1657_v11  ;;  %v1656_v15 = vmul.f32 %v1649_v12, %v3294_v19 }
0x1ab9   :  { %v1666_v16 = vrot.slane %v1665_v13, 2  ;;  %v1658_v17 = vrot.slane %v1656_v15, 4 }
0x1abb   :  { %v1667_v18 = vadd.f32 %v1666_v16, %v1665_v13  ;;  %v1659_v10 = vadd.f32 %v1658_v17, %v1656_v15 }
0x1abd   :  { %v1668_v36 = vrot.slane %v1667_v18, 1  ;;  %v1660_v37 = vrot.slane %v1659_v10, 2 }
0x1abf   :  { %v1669_v43 = vadd.f32 %v1668_v36, %v1667_v18  ;;  %v1661_v44 = vadd.f32 %v1660_v37, %v1659_v10 }
0x1ac1   :  { %v1675_v45 = vadd.f32 %v1671_v40, %v1669_v43  ;;  %v1662_v46 = vrot.slane %v1661_v44, 1 }
0x1ac3   :  { %v1682_v47 = vadd.f32 %v1678_v53, %v1675_v45  ;;  %v1663_v48 = vadd.f32 %v1662_v46, %v1661_v44 }
0x1ac5   :  { %v1684_v50 = vadd.f32 %v3626_v49, %v1682_v47  ;;  %v1674_v32 = vadd.f32 %v1663_v48, %v3584_v31 }
0x1ac7   :  { %2899 = vtanh.f32 %v1684_v50  ;;  %v1681_v42 = vadd.f32 %v1676_v39, %v1674_v32  ;;  %v2720_v56 = vmul.f32 -1.442695, %v1684_v50 }
0x1ac9   :  { %v1683_v52 = vadd.f32 %v3626_v49, %v1681_v42 }
0x1acb   :  { %2901 = vtanh.f32 %v1683_v52  ;;  %v2719_v57 = vmul.f32 -1.442695, %v1683_v52 }
0x1acc   :  { %2903 = vpow2.f32 %v2720_v56 }
0x1acd   :  { %2905 = vpow2.f32 %v2719_v57 }
0x1ad4   :  { %v2900_v63 = vpop.eup %2899 }
0x1ad5   :  { %1705 = vrot.lane.b32.xlu1 %v2900_v63, %s3166_s1 }
0x1ad8   :  { %v2902_v54 = vpop.eup %2901 }
0x1ad9   :  { %1703 = vrot.lane.b32.xlu1 %v2902_v54, %s3166_s1  ;;  %v2904_v60 = vpop.eup %2903 }
0x1ada   :  { %v1692_v61 = vadd.f32 1.0, %v2904_v60  ;;  %v2906_v62 = vpop.eup %2905 }
0x1adb   :  { %v1691_v31 = vadd.f32 1.0, %v2906_v62 }
0x1adc   :  { %2907 = vrcp.f32 %v1692_v61 }
0x1add   :  { %2909 = vrcp.f32 %v1691_v31 }
0x1ae9   :  { %v2908_v38 = vpop.eup %2907 }
0x1aea   :  { %v2910_v4 = vpop.eup %2909  ;;  %v1700_v6 = vmul.f32 %v2908_v38, %v3549_v5 }
0x1aeb   :  { %v1699_v14 = vmul.f32 %v2910_v4, %v3553_v1 }
0x1b47   :  { %v1706_v2 = vpop.permute.xlu1 %1705 }
0x1b48   :  { %v1710_v3 = vmul.f32 %v2908_v38, %v1706_v2 }
0x1b4a   :  { %1715 = vrot.lane.b32.xlu1 %v1710_v3, %s3167_s29 }
0x1b4b   :  { %v1704_v7 = vpop.permute.xlu1 %1703 }
0x1b4c   :  { %v1709_v41 = vmul.f32 %v2910_v4, %v1704_v7 }
0x1b4e   :  { %1713 = vrot.lane.b32.xlu0 %v1709_v41, %s3167_s29 }
0x1bbc   :  { %v1716_v8 = vpop.permute.xlu1 %1715 }
0x1bbd   :  { %v3636_v9 = vadd.f32 %v1716_v8, %v1700_v6 }
0x1bbf   :  { %2911 = vtanh.f32 %v3636_v9 }
0x1bc0   :  { %v1714_v59 = vpop.permute.xlu0 %1713 }
0x1bc1   :  { %v3640_v11 = vadd.f32 %v1714_v59, %v1699_v14 }
0x1bc3   :  { %2913 = vtanh.f32 %v3640_v11 }
0x1bcc   :  { %v2912_v35 = vpop.eup %2911 }
0x1bcd   :  { %1727 = vrot.lane.b32.xlu1 %v2912_v35, %s3166_s1 }
0x1bd0   :  { %v2914_v12 = vpop.eup %2913 }
0x1bd1   :  { %1725 = vrot.lane.b32.xlu1 %v2914_v12, %s3166_s1 }
0x1c3f   :  { %v1728_v13 = vpop.permute.xlu1 %1727 }
0x1c40   :  { %v1732_v5 = vmul.f32 %v2908_v38, %v1728_v13 }
0x1c42   :  { %v1735_v16 = vrot.slane %v1732_v5, 7 }
0x1c43   :  { %v1726_v15 = vpop.permute.xlu1 %1725 }
0x1c44   :  { %v1731_v17 = vmul.f32 %v2910_v4, %v1726_v15 }
0x1c46   :  { %v1736_v18 = vsel %vm456_vm1, %v1735_v16, %v1731_v17 }
0x1c47   :  { %1737 = vrot.lane.b32.xlu1 %v1736_v18, %s3167_s29 }
0x1cb9   :  { %v1738_v1 = vpop.permute.xlu1 %1737 }
0x1cba   :  { %1740 = vst.msk [vmem:[#allocation3 + $0x8] sm:$0x3] %vm615_vm3, %v1738_v1  ;;  %2721 = vmatmul.mubr.msk.f32.vlgmr.msra.gmra.mxu1 %vm128_vm0, %v1738_v1 }
0x1cbb   :  { %2330 = vmatpush1.msra.mxu1 %v3562_v20  ;;  %2369 = vmatprep.mubr.f32.mxu1 %v3163_v0 }
0x1cbc   :  { %2331 = vmatprep.subr.mxu1 %v3566_v28 }
0x1cbd   :  { %2332 = vmatpush1.msra.mxu1 %v3569_v21 }
0x1cbe   :  { %2333 = vmatprep.subr.mxu1 %v3572_v55 }
0x1cbf   :  { %2334 = vmatpush1.msra.mxu1 %v3575_v22 }
0x1cc0   :  { %2335 = vmatprep.subr.mxu1 %v3578_v25 }
0x1cc1   :  { %2336 = vmatpush1.msra.mxu1 %v3581_v26 }
0x1d7a   :  { %v3657_v10 = vpop.f32.mrf.mxu1 }
0x1d7c   :  { %v1811_v36 = vpop.f32.mrf.mxu1 }
0x1d7d   :  { %v1814_v37 = vadd.f32 %v3589_v33, %v1811_v36 }
0x1d7f   :  { %v1822_v20 = vrot.slane %v1814_v37, %v3309_v30 }
0x1d81   :  { %v1823_v0 = vcombine.high %v1822_v20, %v1822_v20  ;;  %v1830_v28 = vrot.slane %v1822_v20, %v3309_v30 }
0x1d83   :  { %v1837_v21 = vrot.slane %v1823_v0, %v3309_v30  ;;  %v1841_v55 = vrot.slane %v1830_v28, %v3313_v34 }
0x1d85   :  { %v1845_v22 = vrot.slane %v1837_v21, %v3313_v34  ;;  %v1848_v25 = vadd.f32 %v1841_v55, %v3296_v23  ;;  %v1957_v21 = vld [vmem:[#allocation2 + $0xa] sm:$0x3]  ;;  %v1952_v55 = vrot.slane %v3657_v10, 1 }
0x1d87   :  { %v1849_v26 = vadd.f32 %v1845_v22, %v3300_v27  ;;  %2915 = vtanh.f32 %v1848_v25 }
0x1d89   :  { %2917 = vtanh.f32 %v1849_v26  ;;  %v1959_v26 = vrot.slane %v1957_v21, 1 }
0x1d94   :  { %v2916_v39 = vpop.eup %2915 }
0x1d95   :  { %v1852_v40 = vmul.f32 %v3602_v29, %v2916_v39 }
0x1d96   :  { %v2918_v43 = vpop.eup %2917 }
0x1d97   :  { %v1854_v44 = vsel %vm128_vm0, %v1852_v40, 0.0  ;;  %v1853_v53 = vmul.f32 %v3602_v29, %v2918_v43 }
0x1d98   :  { %1855 = vadd.xlane.f32.xlu1 %v1854_v44 }
0x1d99   :  { %v1857_v45 = vsel %vm128_vm0, %v1853_v53, 0.0 }
0x1d9a   :  { %1858 = vadd.xlane.f32.xlu0 %v1857_v45 }
0x1e21   :  { %v1856_v46 = vpop.xlane.xlu1 %1855 }
0x1e22   :  { %v1865_v48 = vrot.slane %v1856_v46, %v3330_v51 }
0x1e23   :  { %v1859_v47 = vpop.xlane.xlu0 %1858 }
0x1e24   :  { %v1869_v50 = vrot.slane %v1859_v47, %v3330_v51 }
0x1e26   :  { %v1870_v32 = vsel %vm456_vm1, %v1869_v50, %v1865_v48 }
0x1e27   :  { %v1872_v42 = vsel %vm459_vm2, %v1870_v32, -inf }
0x1e28   :  { %1873 = vmax.xlane.f32.xlu1 %v1872_v42 }
0x1eb1   :  { %v1874_v52 = vpop.xlane.xlu1 %1873 }
0x1eb2   :  { %v1879_v63 = vrot.slane %v1874_v52, %v3313_v34  ;;  %v1883_v54 = vrot.slane %v1874_v52, %v3336_v58 }
0x1eb4   :  { %v1886_v56 = vsub.f32 %v1856_v46, %v1879_v63  ;;  %v1887_v57 = vsub.f32 %v1859_v47, %v1883_v54 }
0x1eb6   :  { %v1888_v60 = vmul.f32 1.442695, %v1886_v56  ;;  %v1890_v61 = vmul.f32 1.442695, %v1887_v57 }
0x1eb8   :  { %2919 = vpow2.f32 %v1888_v60 }
0x1eb9   :  { %2921 = vpow2.f32 %v1890_v61 }
0x1ec5   :  { %v2920_v62 = vpop.eup %2919 }
0x1ec6   :  { %v2922_v31 = vpop.eup %2921  ;;  %1895 = vperm.xlu1 %2783, %v2920_v62  }
0x1ec7   :  { %1898 = vperm.xlu0 %2784, %v2922_v31  }
0x1f41   :  { %v1896_v38 = vpop.permute.xlu1 %1895 }
0x1f42   :  { %v1899_v2 = vpop.permute.xlu0 %1898  ;;  %v1903_v3 = vrot.slane %v1896_v38, %v3330_v51 }
0x1f43   :  { %v1907_v4 = vrot.slane %v1899_v2, %v3330_v51 }
0x1f45   :  { %v1908_v7 = vsel %vm456_vm1, %v1907_v4, %v1903_v3 }
0x1f46   :  { %v1910_v41 = vsel %vm459_vm2, %v1908_v7, 0.0 }
0x1f47   :  { %1911 = vadd.xlane.f32.xlu1 %v1910_v41 }
0x1fd0   :  { %v1912_v6 = vpop.xlane.xlu1 %1911 }
0x1fd1   :  { %2923 = vrcp.f32 %v1912_v6 }
0x1fde   :  { %v2924_v8 = vpop.eup %2923 }
0x1fdf   :  { %v1922_v14 = vrot.slane %v2924_v8, %v3336_v58  ;;  %v1918_v35 = vrot.slane %v2924_v8, %v3313_v34 }
0x1fe1   :  { %v1926_v59 = vmul.f32 %v2922_v31, %v1922_v14  ;;  %v1925_v12 = vmul.f32 %v2920_v62, %v1918_v35 }
0x1fe3   :  { %1934 = vperm.xlu0 %2784, %v1926_v59  }
0x1fe7   :  { %1929 = vperm.xlu0 %2784, %v1925_v12  }
0x205e   :  { %v1935_v13 = vpop.permute.xlu0 %1934 }
0x205f   :  { %v1938_v5 = vmul.f32 %v1935_v13, %v3298_v24 }
0x2061   :  { %v1945_v15 = vrot.slane %v1938_v5, 4 }
0x2062   :  { %v1930_v16 = vpop.permute.xlu0 %1929 }
0x2063   :  { %v1946_v17 = vadd.f32 %v1945_v15, %v1938_v5  ;;  %v1937_v18 = vmul.f32 %v1930_v16, %v3294_v19  ;;  %v2584_v5 = vld [vmem:[#allocation3] sm:$0xff] }
0x2065   :  { %v1947_v1 = vrot.slane %v1946_v17, 2  ;;  %v1939_v36 = vrot.slane %v1937_v18, 4 }
0x2067   :  { %v1948_v37 = vadd.f32 %v1947_v1, %v1946_v17  ;;  %v1940_v20 = vadd.f32 %v1939_v36, %v1937_v18 }
0x2069   :  { %v1949_v0 = vrot.slane %v1948_v37, 1  ;;  %v1941_v28 = vrot.slane %v1940_v20, 2 }
0x206b   :  { %v1950_v22 = vadd.f32 %v1949_v0, %v1948_v37  ;;  %v1942_v25 = vadd.f32 %v1941_v28, %v1940_v20 }
0x206d   :  { %v1956_v39 = vadd.f32 %v1952_v55, %v1950_v22  ;;  %v1943_v40 = vrot.slane %v1942_v25, 1 }
0x206f   :  { %v1963_v43 = vadd.f32 %v1959_v26, %v1956_v39  ;;  %v1944_v44 = vadd.f32 %v1943_v40, %v1942_v25 }
0x2071   :  { %v1965_v53 = vadd.f32 %v3626_v49, %v1963_v43  ;;  %v1955_v45 = vadd.f32 %v1944_v44, %v3657_v10 }
0x2073   :  { %2925 = vtanh.f32 %v1965_v53  ;;  %v1962_v46 = vadd.f32 %v1957_v21, %v1955_v45  ;;  %v2723_v32 = vmul.f32 -1.442695, %v1965_v53 }
0x2075   :  { %v1964_v47 = vadd.f32 %v3626_v49, %v1962_v46 }
0x2077   :  { %2927 = vtanh.f32 %v1964_v47  ;;  %v2722_v42 = vmul.f32 -1.442695, %v1964_v47 }
0x2078   :  { %2929 = vpow2.f32 %v2723_v32 }
0x2079   :  { %2931 = vpow2.f32 %v2722_v42 }
0x2080   :  { %v2926_v48 = vpop.eup %2925 }
0x2081   :  { %1986 = vrot.lane.b32.xlu0 %v2926_v48, %s3166_s1 }
0x2084   :  { %v2928_v50 = vpop.eup %2927 }
0x2085   :  { %1984 = vrot.lane.b32.xlu0 %v2928_v50, %s3166_s1  ;;  %v2930_v52 = vpop.eup %2929 }
0x2086   :  { %v1973_v63 = vadd.f32 1.0, %v2930_v52  ;;  %v2932_v54 = vpop.eup %2931 }
0x2087   :  { %v1972_v10 = vadd.f32 1.0, %v2932_v54 }
0x2088   :  { %2933 = vrcp.f32 %v1973_v63 }
0x2089   :  { %2935 = vrcp.f32 %v1972_v10 }
0x2095   :  { %v2934_v56 = vpop.eup %2933 }
0x2096   :  { %v2936_v61 = vpop.eup %2935  ;;  %v1981_v38 = vmul.f32 %v2934_v56, %v3636_v9 }
0x2097   :  { %v1980_v4 = vmul.f32 %v2936_v61, %v3640_v11 }
0x20f3   :  { %v1987_v57 = vpop.permute.xlu0 %1986 }
0x20f4   :  { %v1991_v60 = vmul.f32 %v2934_v56, %v1987_v57 }
0x20f6   :  { %1996 = vrot.lane.b32.xlu0 %v1991_v60, %s3167_s29 }
0x20f7   :  { %v1985_v62 = vpop.permute.xlu0 %1984 }
0x20f8   :  { %v1990_v31 = vmul.f32 %v2936_v61, %v1985_v62 }
0x20fa   :  { %1994 = vrot.lane.b32.xlu0 %v1990_v31, %s3167_s29 }
0x2168   :  { %v1997_v2 = vpop.permute.xlu0 %1996 }
0x2169   :  { %v3694_v3 = vadd.f32 %v1997_v2, %v1981_v38 }
0x216b   :  { %2937 = vtanh.f32 %v3694_v3 }
0x216c   :  { %v1995_v7 = vpop.permute.xlu0 %1994 }
0x216d   :  { %v3698_v41 = vadd.f32 %v1995_v7, %v1980_v4 }
0x216f   :  { %2939 = vtanh.f32 %v3698_v41 }
0x2178   :  { %v2938_v6 = vpop.eup %2937 }
0x2179   :  { %2008 = vrot.lane.b32.xlu0 %v2938_v6, %s3166_s1 }
0x217c   :  { %v2940_v8 = vpop.eup %2939 }
0x217d   :  { %2006 = vrot.lane.b32.xlu0 %v2940_v8, %s3166_s1 }
0x21eb   :  { %v2009_v14 = vpop.permute.xlu0 %2008 }
0x21ec   :  { %v2013_v9 = vmul.f32 %v2934_v56, %v2009_v14 }
0x21ee   :  { %v2016_v35 = vrot.slane %v2013_v9, 7 }
0x21ef   :  { %v2007_v59 = vpop.permute.xlu0 %2006 }
0x21f0   :  { %v2012_v12 = vmul.f32 %v2936_v61, %v2007_v59 }
0x21f2   :  { %v2017_v13 = vsel %vm456_vm1, %v2016_v35, %v2012_v12 }
0x21f3   :  { %2018 = vrot.lane.b32.xlu1 %v2017_v13, %s3167_s29 }
0x2265   :  { %v2019_v11 = vpop.permute.xlu1 %2018 }
0x2266   :  { %2021 = vst.msk [vmem:[#allocation3 + $0xa] sm:$0x3] %vm615_vm3, %v2019_v11  ;;  %2724 = vmatmul.mubr.msk.f32.vlgmr.msra.gmra.mxu0 %vm128_vm0, %v2019_v11 }
0x2267   :  { %2764 = vmatprep.mubr.msk.f32.mxu0 %vm128_vm0, %v2584_v5 }
0x2326   :  { %v3708_v15 = vpop.f32.mrf.mxu0 }
0x2328   :  { %v2092_v16 = vpop.f32.mrf.mxu0 }
0x2329   :  { %v2095_v17 = vadd.f32 %v3589_v33, %v2092_v16 }
0x232b   :  { %v2103_v18 = vrot.slane %v2095_v17, %v3309_v30 }
0x232d   :  { %v2104_v1 = vcombine.high %v2103_v18, %v2103_v18  ;;  %v2111_v36 = vrot.slane %v2103_v18, %v3309_v30 }
0x232f   :  { %v2118_v37 = vrot.slane %v2104_v1, %v3309_v30  ;;  %v2122_v20 = vrot.slane %v2111_v36, %v3313_v34 }
0x2331   :  { %v2126_v0 = vrot.slane %v2118_v37, %v3313_v34  ;;  %v2129_v28 = vadd.f32 %v2122_v20, %v3296_v23  ;;  %v2238_v37 = vld [vmem:[#allocation2 + $0xc] sm:$0x3]  ;;  %v2233_v20 = vrot.slane %v3708_v15, 1 }
0x2333   :  { %v2130_v21 = vadd.f32 %v2126_v0, %v3300_v27  ;;  %2941 = vtanh.f32 %v2129_v28 }
0x2335   :  { %2943 = vtanh.f32 %v2130_v21  ;;  %v2240_v21 = vrot.slane %v2238_v37, 1 }
0x2340   :  { %v2942_v55 = vpop.eup %2941 }
0x2341   :  { %v2133_v22 = vmul.f32 %v3602_v29, %v2942_v55 }
0x2342   :  { %v2944_v25 = vpop.eup %2943 }
0x2343   :  { %v2135_v26 = vsel %vm128_vm0, %v2133_v22, 0.0  ;;  %v2134_v39 = vmul.f32 %v3602_v29, %v2944_v25 }
0x2344   :  { %2136 = vadd.xlane.f32.xlu0 %v2135_v26 }
0x2345   :  { %v2138_v40 = vsel %vm128_vm0, %v2134_v39, 0.0 }
0x2346   :  { %2139 = vadd.xlane.f32.xlu1 %v2138_v40 }
0x23cd   :  { %v2137_v43 = vpop.xlane.xlu0 %2136 }
0x23ce   :  { %v2146_v53 = vrot.slane %v2137_v43, %v3330_v51 }
0x23cf   :  { %v2140_v44 = vpop.xlane.xlu1 %2139 }
0x23d0   :  { %v2150_v45 = vrot.slane %v2140_v44, %v3330_v51 }
0x23d2   :  { %v2151_v46 = vsel %vm456_vm1, %v2150_v45, %v2146_v53 }
0x23d3   :  { %v2153_v47 = vsel %vm459_vm2, %v2151_v46, -inf }
0x23d4   :  { %2154 = vmax.xlane.f32.xlu0 %v2153_v47 }
0x245d   :  { %v2155_v48 = vpop.xlane.xlu0 %2154 }
0x245e   :  { %v2160_v50 = vrot.slane %v2155_v48, %v3313_v34  ;;  %v2164_v32 = vrot.slane %v2155_v48, %v3336_v58 }
0x2460   :  { %v2167_v42 = vsub.f32 %v2137_v43, %v2160_v50  ;;  %v2168_v52 = vsub.f32 %v2140_v44, %v2164_v32 }
0x2462   :  { %v2169_v63 = vmul.f32 1.442695, %v2167_v42  ;;  %v2171_v54 = vmul.f32 1.442695, %v2168_v52 }
0x2464   :  { %2945 = vpow2.f32 %v2169_v63 }
0x2465   :  { %2947 = vpow2.f32 %v2171_v54 }
0x2471   :  { %v2946_v10 = vpop.eup %2945 }
0x2472   :  { %v2948_v56 = vpop.eup %2947  ;;  %2176 = vperm.xlu0 %2784, %v2946_v10  }
0x2473   :  { %2179 = vperm.xlu1 %2783, %v2948_v56  }
0x24ed   :  { %v2177_v57 = vpop.permute.xlu0 %2176 }
0x24ee   :  { %v2180_v60 = vpop.permute.xlu1 %2179  ;;  %v2184_v61 = vrot.slane %v2177_v57, %v3330_v51 }
0x24ef   :  { %v2188_v62 = vrot.slane %v2180_v60, %v3330_v51 }
0x24f1   :  { %v2189_v31 = vsel %vm456_vm1, %v2188_v62, %v2184_v61 }
0x24f2   :  { %v2191_v38 = vsel %vm459_vm2, %v2189_v31, 0.0 }
0x24f3   :  { %2192 = vadd.xlane.f32.xlu0 %v2191_v38 }
0x257c   :  { %v2193_v2 = vpop.xlane.xlu0 %2192 }
0x257d   :  { %2949 = vrcp.f32 %v2193_v2 }
0x258a   :  { %v2950_v4 = vpop.eup %2949 }
0x258b   :  { %v2203_v7 = vrot.slane %v2950_v4, %v3336_v58  ;;  %v2199_v8 = vrot.slane %v2950_v4, %v3313_v34 }
0x258d   :  { %v2207_v6 = vmul.f32 %v2948_v56, %v2203_v7  ;;  %v2206_v14 = vmul.f32 %v2946_v10, %v2199_v8 }
0x258f   :  { %2215 = vperm.xlu1 %2783, %v2207_v6  }
0x2593   :  { %2210 = vperm.xlu1 %2783, %v2206_v14  }
0x260a   :  { %v2216_v9 = vpop.permute.xlu1 %2215 }
0x260b   :  { %v2219_v59 = vmul.f32 %v2216_v9, %v3298_v24 }
0x260d   :  { %v2226_v35 = vrot.slane %v2219_v59, 4 }
0x260e   :  { %v2211_v12 = vpop.permute.xlu1 %2210 }
0x260f   :  { %v2227_v13 = vadd.f32 %v2226_v35, %v2219_v59  ;;  %v2218_v11 = vmul.f32 %v2211_v12, %v3294_v19 }
0x2611   :  { %v2228_v5 = vrot.slane %v2227_v13, 2  ;;  %v2220_v16 = vrot.slane %v2218_v11, 4 }
0x2613   :  { %v2229_v17 = vadd.f32 %v2228_v5, %v2227_v13  ;;  %v2221_v18 = vadd.f32 %v2220_v16, %v2218_v11 }
0x2615   :  { %v2230_v1 = vrot.slane %v2229_v17, 1  ;;  %v2222_v36 = vrot.slane %v2221_v18, 2 }
0x2617   :  { %v2231_v0 = vadd.f32 %v2230_v1, %v2229_v17  ;;  %v2223_v28 = vadd.f32 %v2222_v36, %v2221_v18 }
0x2619   :  { %v2237_v55 = vadd.f32 %v2233_v20, %v2231_v0  ;;  %v2224_v22 = vrot.slane %v2223_v28, 1 }
0x261b   :  { %v2244_v25 = vadd.f32 %v2240_v21, %v2237_v55  ;;  %v2225_v26 = vadd.f32 %v2224_v22, %v2223_v28 }
0x261d   :  { %v2246_v39 = vadd.f32 %v3626_v49, %v2244_v25  ;;  %v2236_v40 = vadd.f32 %v2225_v26, %v3708_v15 }
0x261f   :  { %2951 = vtanh.f32 %v2246_v39  ;;  %v2243_v43 = vadd.f32 %v2238_v37, %v2236_v40  ;;  %v2726_v46 = vmul.f32 -1.442695, %v2246_v39 }
0x2621   :  { %v2245_v44 = vadd.f32 %v3626_v49, %v2243_v43 }
0x2623   :  { %2953 = vtanh.f32 %v2245_v44  ;;  %v2725_v47 = vmul.f32 -1.442695, %v2245_v44 }
0x2624   :  { %2955 = vpow2.f32 %v2726_v46 }
0x2625   :  { %2957 = vpow2.f32 %v2725_v47 }
0x262c   :  { %v2952_v53 = vpop.eup %2951 }
0x262d   :  { %2267 = vrot.lane.b32.xlu1 %v2952_v53, %s3166_s1 }
0x2630   :  { %v2954_v45 = vpop.eup %2953 }
0x2631   :  { %2265 = vrot.lane.b32.xlu1 %v2954_v45, %s3166_s1  ;;  %v2956_v48 = vpop.eup %2955 }
0x2632   :  { %v2254_v50 = vadd.f32 1.0, %v2956_v48  ;;  %v2958_v32 = vpop.eup %2957 }
0x2633   :  { %v2253_v15 = vadd.f32 1.0, %v2958_v32 }
0x2634   :  { %2959 = vrcp.f32 %v2254_v50 }
0x2635   :  { %2961 = vrcp.f32 %v2253_v15 }
0x2641   :  { %v2960_v42 = vpop.eup %2959 }
0x2642   :  { %v2962_v54 = vpop.eup %2961  ;;  %v2262_v57 = vmul.f32 %v2960_v42, %v3694_v3 }
0x2643   :  { %v2261_v62 = vmul.f32 %v2962_v54, %v3698_v41 }
0x269f   :  { %v2268_v52 = vpop.permute.xlu1 %2267 }
0x26a0   :  { %v2272_v63 = vmul.f32 %v2960_v42, %v2268_v52 }
0x26a2   :  { %2277 = vrot.lane.b32.xlu1 %v2272_v63, %s3167_s29 }
0x26a3   :  { %v2266_v10 = vpop.permute.xlu1 %2265 }
0x26a4   :  { %v2271_v56 = vmul.f32 %v2962_v54, %v2266_v10 }
0x26a6   :  { %2275 = vrot.lane.b32.xlu0 %v2271_v56, %s3167_s29 }
0x2714   :  { %v2278_v60 = vpop.permute.xlu1 %2277 }
0x2715   :  { %v3745_v61 = vadd.f32 %v2278_v60, %v2262_v57 }
0x2717   :  { %2963 = vtanh.f32 %v3745_v61 }
0x2718   :  { %v2276_v31 = vpop.permute.xlu0 %2275 }
0x2719   :  { %v3749_v38 = vadd.f32 %v2276_v31, %v2261_v62 }
0x271b   :  { %2965 = vtanh.f32 %v3749_v38 }
0x2724   :  { %v2964_v2 = vpop.eup %2963 }
0x2725   :  { %2289 = vrot.lane.b32.xlu1 %v2964_v2, %s3166_s1 }
0x2728   :  { %v2966_v4 = vpop.eup %2965 }
0x2729   :  { %2287 = vrot.lane.b32.xlu1 %v2966_v4, %s3166_s1 }
0x2797   :  { %v2290_v7 = vpop.permute.xlu1 %2289 }
0x2798   :  { %v2294_v3 = vmul.f32 %v2960_v42, %v2290_v7 }
0x279a   :  { %v2297_v8 = vrot.slane %v2294_v3, 7 }
0x279b   :  { %v2288_v6 = vpop.permute.xlu1 %2287 }
0x279c   :  { %v2293_v14 = vmul.f32 %v2962_v54, %v2288_v6 }
0x279e   :  { %v2298_v9 = vsel %vm456_vm1, %v2297_v8, %v2293_v14 }
0x279f   :  { %2299 = vrot.lane.b32.xlu1 %v2298_v9, %s3167_s29  ;;  %v2519_v9 = vld [vmem:[#allocation2 + $0xe] sm:$0x3] }
0x2811   :  { %v2300_v41 = vpop.permute.xlu1 %2299 }
0x2812   :  { %2302 = vst.msk [vmem:[#allocation3 + $0xc] sm:$0x3] %vm615_vm3, %v2300_v41  ;;  %2727 = vmatmul.mubr.msk.f32.vlgmr.msra.gmra.mxu1 %vm128_vm0, %v2300_v41 }
0x28d2   :  { %v3758_v59 = vpop.f32.mrf.mxu1 }
0x28d4   :  { %v2373_v35 = vpop.f32.mrf.mxu1 }
0x28d5   :  { %v2376_v12 = vadd.f32 %v3589_v33, %v2373_v35 }
0x28d7   :  { %v2384_v13 = vrot.slane %v2376_v12, %v3309_v30  ;;  %v2521_v12 = vrot.slane %v2519_v9, 1 }
0x28d9   :  { %v2385_v11 = vcombine.high %v2384_v13, %v2384_v13  ;;  %v2392_v5 = vrot.slane %v2384_v13, %v3309_v30 }
0x28db   :  { %v2399_v16 = vrot.slane %v2385_v11, %v3309_v30  ;;  %v2403_v17 = vrot.slane %v2392_v5, %v3313_v34 }
0x28dd   :  { %v2407_v18 = vrot.slane %v2399_v16, %v3313_v34  ;;  %v2410_v1 = vadd.f32 %v2403_v17, %v3296_v23 }
0x28df   :  { %v2411_v36 = vadd.f32 %v2407_v18, %v3300_v27  ;;  %2967 = vtanh.f32 %v2410_v1 }
0x28e1   :  { %2969 = vtanh.f32 %v2411_v36 }
0x28ec   :  { %v2968_v37 = vpop.eup %2967 }
0x28ed   :  { %v2414_v33 = vmul.f32 %v3602_v29, %v2968_v37 }
0x28ee   :  { %v2970_v20 = vpop.eup %2969 }
0x28ef   :  { %v2416_v0 = vsel %vm128_vm0, %v2414_v33, 0.0  ;;  %v2415_v28 = vmul.f32 %v3602_v29, %v2970_v20 }
0x28f0   :  { %2417 = vadd.xlane.f32.xlu1 %v2416_v0 }
0x28f1   :  { %v2419_v30 = vsel %vm128_vm0, %v2415_v28, 0.0 }
0x28f2   :  { %2420 = vadd.xlane.f32.xlu0 %v2419_v30 }
0x2979   :  { %v2418_v21 = vpop.xlane.xlu1 %2417 }
0x297a   :  { %v2427_v23 = vrot.slane %v2418_v21, %v3330_v51 }
0x297b   :  { %v2421_v55 = vpop.xlane.xlu0 %2420 }
0x297c   :  { %v2431_v27 = vrot.slane %v2421_v55, %v3330_v51 }
0x297e   :  { %v2432_v22 = vsel %vm456_vm1, %v2431_v27, %v2427_v23 }
0x297f   :  { %v2434_v25 = vsel %vm459_vm2, %v2432_v22, -inf }
0x2980   :  { %2435 = vmax.xlane.f32.xlu1 %v2434_v25 }
0x2a09   :  { %v2436_v26 = vpop.xlane.xlu1 %2435 }
0x2a0a   :  { %v2441_v39 = vrot.slane %v2436_v26, %v3313_v34  ;;  %v2445_v29 = vrot.slane %v2436_v26, %v3336_v58 }
0x2a0c   :  { %v2448_v40 = vsub.f32 %v2418_v21, %v2441_v39  ;;  %v2449_v43 = vsub.f32 %v2421_v55, %v2445_v29 }
0x2a0e   :  { %v2450_v44 = vmul.f32 1.442695, %v2448_v40  ;;  %v2452_v53 = vmul.f32 1.442695, %v2449_v43 }
0x2a10   :  { %2971 = vpow2.f32 %v2450_v44 }
0x2a11   :  { %2973 = vpow2.f32 %v2452_v53  ;;  %v2589_v53 = vld [vmem:[#allocation13 + $0x18] sm:$0xff] }
0x2a12   :  { %2756 = vmatprep.subr.mxu0 %v2589_v53 }
0x2a13   :  { %2757 = vmatpush3.msra.mxu0 %v2589_v53 }
0x2a1d   :  { %v2972_v45 = vpop.eup %2971 }
0x2a1e   :  { %v2974_v46 = vpop.eup %2973  ;;  %2457 = vperm.xlu1 %2783, %v2972_v45  }
0x2a1f   :  { %2460 = vperm.xlu0 %2784, %v2974_v46  }
0x2a99   :  { %v2458_v47 = vpop.permute.xlu1 %2457 }
0x2a9a   :  { %v2461_v48 = vpop.permute.xlu0 %2460  ;;  %v2465_v50 = vrot.slane %v2458_v47, %v3330_v51 }
0x2a9b   :  { %v2469_v32 = vrot.slane %v2461_v48, %v3330_v51 }
0x2a9d   :  { %v2470_v15 = vsel %vm456_vm1, %v2469_v32, %v2465_v50 }
0x2a9e   :  { %v2472_v42 = vsel %vm459_vm2, %v2470_v15, 0.0 }
0x2a9f   :  { %2473 = vadd.xlane.f32.xlu1 %v2472_v42 }
0x2b28   :  { %v2474_v52 = vpop.xlane.xlu1 %2473 }
0x2b29   :  { %2975 = vrcp.f32 %v2474_v52 }
0x2b36   :  { %v2976_v63 = vpop.eup %2975 }
0x2b37   :  { %v2484_v54 = vrot.slane %v2976_v63, %v3336_v58  ;;  %v2480_v56 = vrot.slane %v2976_v63, %v3313_v34  ;;  %v2514_v34 = vrot.slane %v3758_v59, 1  ;;  %v2730_v63 = vld [vmem:[%s3820_s9] ss:$0 sm:$0xff] }
0x2b39   :  { %v2488_v10 = vmul.f32 %v2974_v46, %v2484_v54  ;;  %v2487_v57 = vmul.f32 %v2972_v45, %v2480_v56  ;;  %v2588_v45 = vld [vmem:[#allocation13 + $0x10] sm:$0xff]  ;;  %v2587_v46 = vld [vmem:[#allocation13 + $0x8] sm:$0xff] }
0x2b3a   :  { %2758 = vmatprep.subr.mxu0 %v2588_v45 }
0x2b3b   :  { %2496 = vperm.xlu0 %2784, %v2488_v10   ;;  %2759 = vmatpush3.msra.mxu0 %v2588_v45 }
0x2b3c   :  { %2760 = vmatprep.subr.mxu0 %v2587_v46 }
0x2b3d   :  { %2761 = vmatpush3.msra.mxu0 %v2587_v46 }
0x2b3f   :  { %2491 = vperm.xlu0 %2784, %v2487_v57  }
0x2bb6   :  { %v2497_v60 = vpop.permute.xlu0 %2496 }
0x2bb7   :  { %v2500_v62 = vmul.f32 %v2497_v60, %v3298_v24 }
0x2bb9   :  { %v2507_v51 = vrot.slane %v2500_v62, 4 }
0x2bba   :  { %v2492_v31 = vpop.permute.xlu0 %2491 }
0x2bbb   :  { %v2508_v2 = vadd.f32 %v2507_v51, %v2500_v62  ;;  %v2499_v4 = vmul.f32 %v2492_v31, %v3294_v19 }
0x2bbd   :  { %v2509_v7 = vrot.slane %v2508_v2, 2  ;;  %v2501_v3 = vrot.slane %v2499_v4, 4 }
0x2bbf   :  { %v2510_v6 = vadd.f32 %v2509_v7, %v2508_v2  ;;  %v2502_v8 = vadd.f32 %v2501_v3, %v2499_v4 }
0x2bc1   :  { %v2511_v14 = vrot.slane %v2510_v6, 1  ;;  %v2503_v58 = vrot.slane %v2502_v8, 2 }
0x2bc3   :  { %v2512_v41 = vadd.f32 %v2511_v14, %v2510_v6  ;;  %v2504_v35 = vadd.f32 %v2503_v58, %v2502_v8 }
0x2bc5   :  { %v2518_v13 = vadd.f32 %v2514_v34, %v2512_v41  ;;  %v2505_v11 = vrot.slane %v2504_v35, 1 }
0x2bc7   :  { %v2525_v24 = vadd.f32 %v2521_v12, %v2518_v13  ;;  %v2506_v5 = vadd.f32 %v2505_v11, %v2504_v35 }
0x2bc9   :  { %v2527_v16 = vadd.f32 %v3626_v49, %v2525_v24  ;;  %v2517_v19 = vadd.f32 %v2506_v5, %v3758_v59 }
0x2bcb   :  { %2977 = vtanh.f32 %v2527_v16  ;;  %v2524_v17 = vadd.f32 %v2519_v9, %v2517_v19  ;;  %v2729_v37 = vmul.f32 -1.442695, %v2527_v16 }
0x2bcd   :  { %v2526_v18 = vadd.f32 %v3626_v49, %v2524_v17 }
0x2bcf   :  { %2979 = vtanh.f32 %v2526_v18  ;;  %v2728_v33 = vmul.f32 -1.442695, %v2526_v18 }
0x2bd0   :  { %2981 = vpow2.f32 %v2729_v37 }
0x2bd1   :  { %2983 = vpow2.f32 %v2728_v33 }
0x2bd8   :  { %v2978_v1 = vpop.eup %2977 }
0x2bd9   :  { %2548 = vrot.lane.b32.xlu0 %v2978_v1, %s3166_s1 }
0x2bdc   :  { %v2980_v36 = vpop.eup %2979 }
0x2bdd   :  { %2546 = vrot.lane.b32.xlu0 %v2980_v36, %s3166_s1  ;;  %v2982_v20 = vpop.eup %2981 }
0x2bde   :  { %v2535_v0 = vadd.f32 1.0, %v2982_v20  ;;  %v2984_v28 = vpop.eup %2983 }
0x2bdf   :  { %v2534_v59 = vadd.f32 1.0, %v2984_v28 }
0x2be0   :  { %2985 = vrcp.f32 %v2535_v0 }
0x2be1   :  { %2987 = vrcp.f32 %v2534_v59 }
0x2bed   :  { %v2986_v30 = vpop.eup %2985 }
0x2bee   :  { %v2988_v55 = vpop.eup %2987  ;;  %v2543_v22 = vmul.f32 %v2986_v30, %v3745_v61  ;;  %v2586_v61 = vld [vmem:[#allocation13] sm:$0xff] }
0x2bef   :  { %v2542_v39 = vmul.f32 %v2988_v55, %v3749_v38  ;;  %2762 = vmatprep.subr.mxu0 %v2586_v61 }
0x2bf0   :  { %2763 = vmatpush3.msra.mxu0 %v2586_v61 }
0x2c4b   :  { %v2549_v21 = vpop.permute.xlu0 %2548 }
0x2c4c   :  { %v2553_v49 = vmul.f32 %v2986_v30, %v2549_v21 }
0x2c4e   :  { %2558 = vrot.lane.b32.xlu0 %v2553_v49, %s3167_s29 }
0x2c4f   :  { %v2547_v23 = vpop.permute.xlu0 %2546 }
0x2c50   :  { %v2552_v27 = vmul.f32 %v2988_v55, %v2547_v23 }
0x2c52   :  { %2556 = vrot.lane.b32.xlu0 %v2552_v27, %s3167_s29 }
0x2cc0   :  { %v2559_v25 = vpop.permute.xlu0 %2558 }
0x2cc1   :  { %v2563_v26 = vadd.f32 %v2559_v25, %v2543_v22 }
0x2cc3   :  { %2989 = vtanh.f32 %v2563_v26 }
0x2cc4   :  { %v2557_v29 = vpop.permute.xlu0 %2556 }
0x2cc5   :  { %v2562_v40 = vadd.f32 %v2557_v29, %v2542_v39 }
0x2cc7   :  { %2991 = vtanh.f32 %v2562_v40 }
0x2cd0   :  { %v2990_v43 = vpop.eup %2989 }
0x2cd1   :  { %2570 = vrot.lane.b32.xlu0 %v2990_v43, %s3166_s1 }
0x2cd4   :  { %v2992_v44 = vpop.eup %2991 }
0x2cd5   :  { %2568 = vrot.lane.b32.xlu0 %v2992_v44, %s3166_s1 }
0x2d43   :  { %v2571_v47 = vpop.permute.xlu0 %2570 }
0x2d44   :  { %v2575_v38 = vmul.f32 %v2986_v30, %v2571_v47 }
0x2d46   :  { %v2578_v50 = vrot.slane %v2575_v38, 7 }
0x2d47   :  { %v2569_v48 = vpop.permute.xlu0 %2568 }
0x2d48   :  { %v2574_v32 = vmul.f32 %v2988_v55, %v2569_v48 }
0x2d4a   :  { %v2579_v15 = vsel %vm456_vm1, %v2578_v50, %v2574_v32 }
0x2d4b   :  { %2580 = vrot.lane.b32.xlu1 %v2579_v15, %s3167_s29 }
0x2dbd   :  { %v2581_v42 = vpop.permute.xlu1 %2580 }
0x2dbe   :  { %2583 = vst.msk [vmem:[#allocation3 + $0xe] sm:$0x3] %vm615_vm3, %v2581_v42 }
0x2dc5   :  { %v2585_v52 = vld [vmem:[#allocation3 + $0x8] sm:$0xff] }
0x2dc6   :  { %2765 = vmatmul.mubr.msk.f32.vlgmr.msra.gmra.mxu0 %vm128_vm0, %v2585_v52 }
0x2e86   :  { %v2766_v54 = vpop.f32.mrf.mxu0 }
0x2e87   :  { %v2675_v10 = vadd.f32 %v2766_v54, %v2730_v63 }
0x2e88   :  { %v2669_v56 = vpop.f32.mrf.mxu0 }
0x2e89   :  { %2679 = vst [vmem:[#allocation15 + $0x8] sm:$0xff] %v2675_v10  ;;  %v2670_v57 = vadd.f32 %v2730_v63, %v2669_v56 }
0x2e8b   :  { %2678 = vst [vmem:[#allocation15] sm:$0xff] %v2670_v57 }
0x2e8c   :  { %3134 = shalt.err (!%p3131_p6)
}
0x2e8d   :  { %2691 = dma.vmem_to_hbm [thread:$0]  %s2686_s15, 256, %s3821_s10, [#allocation6], %s3154_s16, %s3154_s16, %s3155_s17  }
0x2e8e   :  { %3151 = dma.done.wait [#allocation6], 256  }
0x2e8f   :  { %3152 = vsyncadd [#allocation6], 4294967040 }
0x2e90   :  { %2695 = vsyncpa [#allocation5], 1 }
0x2e91   :  { %2696 = vsyncpa [#allocation8], 1 }
0x2e92   :  { %2697 = vsyncpa [#allocation11], 1 }
0x2e93   :  { %2698 = vsyncpa [#allocation14], 1 }
0x2e94   :  { %2699 = vsyncpa [#allocation6], 1 }

</bundles_post_ra>
